<compile_context>
chip_gen: v5e
topology: v5e:2x2
jax: 0.10.0
libtpu: 0.0.40
codegen_flags: <defaults>
</compile_context>

<pallas_src>
import functools

import jax
import jax.numpy as jnp
from jax.experimental import pallas as pl
from jax.experimental.pallas import tpu as pltpu


# ----------------------------------------------------------------------------
# Tiling helpers
# ----------------------------------------------------------------------------
_VMEM_LIMIT = 32 * 1024 * 1024   # raise scoped VMEM explicitly (v5e default is 16 MiB)
_TILE_BUDGET = 12 * 1024 * 1024  # budget for double-buffered row tiles (v7x-safe)
_MAX_M_TILE = 512                # ~85% of HBM roofline per measured tile sweep


def _round_up(x, m):
    return (x + m - 1) // m * m


def _m_tiling(m, row_bytes):
    """Pick an M tile (multiple of 16, bf16-safe) whose double-buffered row tiles
    fit the VMEM budget. Returns (tile, grid, padded_M)."""
    tm = min(_MAX_M_TILE, _round_up(m, 16))
    while tm > 16 and 2 * tm * row_bytes > _TILE_BUDGET:
        tm = _round_up(tm // 2, 16)
    grid_m = pl.cdiv(m, tm)
    return tm, grid_m, grid_m * tm


def _pad_rows(a, m_pad):
    m = a.shape[0]
    if m == m_pad:
        return a
    return jnp.pad(a, ((0, m_pad - m),) + ((0, 0),) * (a.ndim - 1))


def _compiler_params():
    return pltpu.CompilerParams(
        dimension_semantics=("parallel",),
        vmem_limit_bytes=_VMEM_LIMIT,
    )


# ----------------------------------------------------------------------------
# Pallas kernels
# ----------------------------------------------------------------------------
def _mm_kernel(x_ref, w_ref, b_ref, o_ref, *, relu_in, relu_out):
    """o = [relu](relu?(x) @ w + b); bf16 operands, f32 accumulation."""
    x = x_ref[...]
    if relu_in:
        x = jnp.maximum(x, 0)
    acc = jnp.dot(x, w_ref[...], preferred_element_type=jnp.float32)
    acc = acc + b_ref[...]
    if relu_out:
        acc = jnp.maximum(acc, 0.0)
    o_ref[...] = acc.astype(o_ref.dtype)


def _resblock_kernel(p_ref, w1_ref, b1_ref, w2_ref, b2_ref, r_ref, o_ref):
    """Fused vqvae ResBlock: out = x + Conv1x1(ReLU(Conv3x3(ReLU(x), pad=1))).
    p_ref holds im2col(x); ReLU commutes with zero-padded im2col."""
    h = jnp.maximum(p_ref[...], 0)                                        # bf16
    h = jnp.dot(h, w1_ref[...], preferred_element_type=jnp.float32) + b1_ref[...]
    h = jnp.maximum(h, 0.0).astype(w2_ref.dtype)                          # back to bf16
    y = jnp.dot(h, w2_ref[...], preferred_element_type=jnp.float32)
    y = y + b2_ref[...] + r_ref[...].astype(jnp.float32)                  # f32 residual add
    o_ref[...] = y.astype(o_ref.dtype)


# ----------------------------------------------------------------------------
# Pallas wrappers (M-tiled grids, weights resident)
# ----------------------------------------------------------------------------
def pallas_matmul(x, w, b, *, relu_in=False, relu_out=False, out_dtype=jnp.bfloat16):
    """x: (M, K) bf16, w: (K, N) bf16, b: (N,) f32."""
    m, k = x.shape
    n = w.shape[1]
    tm, grid_m, m_pad = _m_tiling(m, 2 * k + 6 * n)
    xp = _pad_rows(x, m_pad)
    b2 = b.reshape(1, n).astype(jnp.float32)

    out = pl.pallas_call(
        functools.partial(_mm_kernel, relu_in=relu_in, relu_out=relu_out),
        out_shape=jax.ShapeDtypeStruct((m_pad, n), out_dtype),
        grid=(grid_m,),
        in_specs=[
            pl.BlockSpec((tm, k), lambda i: (i, 0)),
            pl.BlockSpec((k, n), lambda i: (0, 0)),
            pl.BlockSpec((1, n), lambda i: (0, 0)),
        ],
        out_specs=pl.BlockSpec((tm, n), lambda i: (i, 0)),
        compiler_params=_compiler_params(),
    )(xp, w, b2)
    return out[:m]


def pallas_resblock(x_nhwc, w1, b1, w2, b2):
    """Fused ResBlock on NHWC bf16 activations."""
    n, h, w, c = x_nhwc.shape
    patches, _ = _im2col(x_nhwc, 3, 3, 1, 1)           # (N*H*W, 9*C) bf16
    res = x_nhwc.reshape(n * h * w, c)
    m, k = patches.shape
    ch = w1.shape[1]
    co = w2.shape[1]

    tm, grid_m, m_pad = _m_tiling(m, 2 * k + 2 * co + 4 * co + 4 * ch)
    patches = _pad_rows(patches, m_pad)
    res = _pad_rows(res, m_pad)

    out = pl.pallas_call(
        _resblock_kernel,
        out_shape=jax.ShapeDtypeStruct((m_pad, co), jnp.bfloat16),
        grid=(grid_m,),
        in_specs=[
            pl.BlockSpec((tm, k), lambda i: (i, 0)),
            pl.BlockSpec((k, ch), lambda i: (0, 0)),
            pl.BlockSpec((1, ch), lambda i: (0, 0)),
            pl.BlockSpec((ch, co), lambda i: (0, 0)),
            pl.BlockSpec((1, co), lambda i: (0, 0)),
            pl.BlockSpec((tm, co), lambda i: (i, 0)),
        ],
        out_specs=pl.BlockSpec((tm, co), lambda i: (i, 0)),
        compiler_params=_compiler_params(),
    )(patches, w1, b1.reshape(1, ch).astype(jnp.float32),
      w2, b2.reshape(1, co).astype(jnp.float32), res)
    return out[:m].reshape(n, h, w, co)


# ----------------------------------------------------------------------------
# Conv2d = im2col (XLA glue, bf16) + Pallas matmul (hot path)
# ----------------------------------------------------------------------------
def _im2col(x, kh, kw, stride, pad):
    """x: (N,H,W,C) -> (N*Ho*Wo, kh*kw*C) patches in (kh, kw, C) order."""
    n, h, w, c = x.shape
    xp = jnp.pad(x, ((0, 0), (pad, pad), (pad, pad), (0, 0)))
    ho = (h + 2 * pad - kh) // stride + 1
    wo = (w + 2 * pad - kw) // stride + 1
    cols = [xp[:, i:i + stride * ho:stride, j:j + stride * wo:stride, :]
            for i in range(kh) for j in range(kw)]
    patches = jnp.concatenate(cols, axis=-1)
    return patches.reshape(n * ho * wo, kh * kw * c), (n, ho, wo)


def conv2d(x, w_mat, b, ksz, stride, pad, *, relu_in=False, relu_out=False,
           out_dtype=jnp.bfloat16):
    """NHWC conv; w_mat is pre-reshaped to (ksz*ksz*ci, co), bf16."""
    co = w_mat.shape[1]
    n, h, w, c = x.shape
    if ksz == 1 and stride == 1 and pad == 0:
        patches, ho, wo = x.reshape(n * h * w, c), h, w
    else:
        patches, (n, ho, wo) = _im2col(x, ksz, ksz, stride, pad)
    y = pallas_matmul(patches, w_mat, b, relu_in=relu_in, relu_out=relu_out,
                      out_dtype=out_dtype)
    return y.reshape(n, ho, wo, co)


# ----------------------------------------------------------------------------
# Parameters: PyTorch-layout init + one-time conversion to kernel layout
# ----------------------------------------------------------------------------
def init_params(key, embed_dim, n_hidden, res_hidden, image_width):
    """PyTorch-layout params: conv (Cout,Cin,kh,kw), linear (out_f,in_f)."""
    nh2 = n_hidden // 2
    fc_in = n_hidden * (image_width // 4) ** 2
    keys = iter(jax.random.split(key, 32))

    def u(k, shape, fan_in):
        bound = 1.0 / jnp.sqrt(float(fan_in))
        return jax.random.uniform(k, shape, jnp.float32, -bound, bound)

    def conv(cout, cin, ksz):
        fan_in = cin * ksz * ksz
        return (u(next(keys), (cout, cin, ksz, ksz), fan_in),
                u(next(keys), (cout,), fan_in))

    def linear(out_f, in_f):
        return (u(next(keys), (out_f, in_f), in_f),
                u(next(keys), (out_f,), in_f))

    p = {}
    p["c1_w"], p["c1_b"] = conv(nh2, 3, 4)
    p["c2_w"], p["c2_b"] = conv(n_hidden, nh2, 4)
    p["c3_w"], p["c3_b"] = conv(n_hidden, n_hidden, 3)
    p["rb1_w1"], p["rb1_b1"] = conv(res_hidden, n_hidden, 3)
    p["rb1_w2"], p["rb1_b2"] = conv(n_hidden, res_hidden, 1)
    p["rb2_w1"], p["rb2_b1"] = conv(res_hidden, n_hidden, 3)
    p["rb2_w2"], p["rb2_b2"] = conv(n_hidden, res_hidden, 1)
    p["c4_w"], p["c4_b"] = conv(n_hidden, n_hidden, 1)
    p["fc_mu_w"], p["fc_mu_b"] = linear(embed_dim, fc_in)
    p["fc_logvar_w"], p["fc_logvar_b"] = linear(embed_dim, fc_in)
    return p


def prepare_kernel_params(p, n_hidden, image_width):
    """One-time layout prep: conv weights -> (kh*kw*ci, co) bf16; fc weight rows
    permuted from NCHW-flatten to NHWC-flatten order and both heads fused along N."""
    def conv_w(wt):
        co, ci, kh, kw = wt.shape
        return jnp.transpose(wt, (2, 3, 1, 0)).reshape(kh * kw * ci, co).astype(jnp.bfloat16)

    hw = image_width // 4

    def fc_w(wt):
        out_f = wt.shape[0]
        wt = wt.reshape(out_f, n_hidden, hw, hw)       # (O, C, H, W) = torch flatten order
        wt = jnp.transpose(wt, (2, 3, 1, 0))           # (H, W, C, O) = NHWC flatten order
        return wt.reshape(hw * hw * n_hidden, out_f).astype(jnp.bfloat16)

    k = {}
    for name in ("c1", "c2", "c3", "c4"):
        k[name + "_w"] = conv_w(p[name + "_w"])
        k[name + "_b"] = p[name + "_b"]
    for name in ("rb1", "rb2"):
        k[name + "_w1"] = conv_w(p[name + "_w1"])
        k[name + "_b1"] = p[name + "_b1"]
        k[name + "_w2"] = conv_w(p[name + "_w2"])
        k[name + "_b2"] = p[name + "_b2"]
    # fused fc_mu / fc_logvar head: single (fc_in, 2*embed_dim) matmul
    k["fc_w"] = jnp.concatenate([fc_w(p["fc_mu_w"]), fc_w(p["fc_logvar_w"])], axis=1)
    k["fc_b"] = jnp.concatenate([p["fc_mu_b"], p["fc_logvar_b"]], axis=0)
    return k


# ----------------------------------------------------------------------------
# VaeEncoder forward
# ----------------------------------------------------------------------------
def vae_encoder_forward(kp, x_nchw, embed_dim):
    # NCHW (PyTorch) -> NHWC, bf16 for the MXU (f32 accumulation inside kernels)
    x = jnp.transpose(x_nchw, (0, 2, 3, 1)).astype(jnp.bfloat16)

    x = conv2d(x, kp["c1_w"], kp["c1_b"], 4, 2, 1, relu_out=True)   # Conv(3, nh/2, 4, 2, 1)+ReLU
    x = conv2d(x, kp["c2_w"], kp["c2_b"], 4, 2, 1, relu_out=True)   # Conv(nh/2, nh, 4, 2, 1)+ReLU
    x = conv2d(x, kp["c3_w"], kp["c3_b"], 3, 1, 1)                  # Conv(nh, nh, 3, 1, 1)

    # Fused ResBlocks: x + Conv1x1(ReLU(Conv3x3(ReLU(x))))
    x = pallas_resblock(x, kp["rb1_w1"], kp["rb1_b1"], kp["rb1_w2"], kp["rb1_b2"])
    x = pallas_resblock(x, kp["rb2_w1"], kp["rb2_b1"], kp["rb2_w2"], kp["rb2_b2"])

    # trailing ReLU -> Conv1x1 -> ReLU (both ReLUs fused into the matmul kernel)
    x = conv2d(x, kp["c4_w"], kp["c4_b"], 1, 1, 0, relu_in=True, relu_out=True)

    # NHWC flatten; fc rows were pre-permuted so no activation transpose is needed
    n = x.shape[0]
    x_flat = x.reshape(n, -1)
    head = pallas_matmul(x_flat, kp["fc_w"], kp["fc_b"], out_dtype=jnp.float32)
    mu, logvar = head[:, :embed_dim], head[:, embed_dim:]
    return mu, logvar


if __name__ == "__main__":
    # small, consistent shapes: batch=2, 3x16x16 images
    embed_dim, n_hidden, res_hidden, image_width = 16, 32, 8, 16

    key = jax.random.PRNGKey(0)
    k_param, k_x = jax.random.split(key)
    params = init_params(k_param, embed_dim, n_hidden, res_hidden, image_width)
    kparams = prepare_kernel_params(params, n_hidden, image_width)   # one-time layout prep
    x = jax.random.normal(k_x, (2, 3, image_width, image_width), jnp.float32)

    fwd = jax.jit(functools.partial(vae_encoder_forward, embed_dim=embed_dim))
    mu, logvar = fwd(kparams, x)
    jax.block_until_ready((mu, logvar))

    assert mu.shape == (2, embed_dim) and logvar.shape == (2, embed_dim)
    assert mu.dtype == jnp.float32 and logvar.dtype == jnp.float32
    print("KERNEL_OK")
</pallas_src>

<mosaic_0001>
module attributes {stable_mosaic.version = 11 : i64} {
  func.func @_mm_kernel(%arg0: i32, %arg1: memref<128x48xbf16, #tpu.memory_space<vmem>>, %arg2: memref<48x16xbf16, #tpu.memory_space<vmem>>, %arg3: memref<1x16xf32, #tpu.memory_space<vmem>>, %arg4: memref<128x16xbf16, #tpu.memory_space<vmem>>) attributes {dimension_semantics = [#tpu.dimension_semantics<parallel>], iteration_bounds = array<i64: 1>, scalar_prefetch = 0 : i64, scratch_operands = 0 : i64, tpu.core_type = #tpu.core_type<tc>, window_params = [{transform_indices = @transform_0, window_bounds = array<i64: 128, 48>}, {pipeline_mode = #tpu.pipeline_mode<synchronous>, transform_indices = @transform_1, window_bounds = array<i64: 48, 16>}, {pipeline_mode = #tpu.pipeline_mode<synchronous>, transform_indices = @transform_2, window_bounds = array<i64: 1, 16>}, {transform_indices = @transform_3, window_bounds = array<i64: 128, 16>}]} {
    %c0 = arith.constant 0 : index
    %c0_0 = arith.constant 0 : index
    %0 = vector.load %arg1[%c0, %c0_0] : memref<128x48xbf16, #tpu.memory_space<vmem>>, vector<128x48xbf16>
    %c0_1 = arith.constant 0 : index
    %c0_2 = arith.constant 0 : index
    %1 = vector.load %arg2[%c0_1, %c0_2] : memref<48x16xbf16, #tpu.memory_space<vmem>>, vector<48x16xbf16>
    %cst = arith.constant dense<0.000000e+00> : vector<128x16xf32>
    %2 = tpu.matmul %0, %1, %cst {dimension_numbers = #tpu.dot_dimension_numbers<[1], [0], [0], [1], [0, 0, 1, 1], [], []>} : vector<128x48xbf16>, vector<48x16xbf16>, vector<128x16xf32> -> vector<128x16xf32>
    %c0_3 = arith.constant 0 : index
    %c0_4 = arith.constant 0 : index
    %3 = vector.load %arg3[%c0_3, %c0_4] : memref<1x16xf32, #tpu.memory_space<vmem>>, vector<1x16xf32>
    %4 = vector.broadcast %3 : vector<1x16xf32> to vector<128x16xf32>
    %5 = arith.addf %2, %4 : vector<128x16xf32>
    %cst_5 = arith.constant 0.000000e+00 : f32
    %6 = vector.broadcast %cst_5 : f32 to vector<128x16xf32>
    %7 = arith.maximumf %5, %6 : vector<128x16xf32>
    %8 = arith.truncf %7 : vector<128x16xf32> to vector<128x16xbf16>
    %c0_6 = arith.constant 0 : index
    %c0_7 = arith.constant 0 : index
    %9 = vector.load %arg4[%c0_6, %c0_7] : memref<128x16xbf16, #tpu.memory_space<vmem>>, vector<128x16xbf16>
    tpu.vector_store %arg4[%c0_6, %c0_7], %8 {strides = array<i32>} : memref<128x16xbf16, #tpu.memory_space<vmem>>, vector<128x16xbf16>,
    return
  }
  func.func @transform_0(%arg0: i32) -> (i32, i32) {
    %c0_i32 = arith.constant 0 : i32
    %c0_i32_0 = arith.constant 0 : i32
    return %arg0, %c0_i32 : i32, i32
  }
  func.func @transform_1(%arg0: i32) -> (i32, i32) {
    %c0_i32 = arith.constant 0 : i32
    %c0_i32_0 = arith.constant 0 : i32
    %c0_i32_1 = arith.constant 0 : i32
    return %c0_i32, %c0_i32_0 : i32, i32
  }
  func.func @transform_2(%arg0: i32) -> (i32, i32) {
    %c0_i32 = arith.constant 0 : i32
    %c0_i32_0 = arith.constant 0 : i32
    %c0_i32_1 = arith.constant 0 : i32
    return %c0_i32, %c0_i32_0 : i32, i32
  }
  func.func @transform_3(%arg0: i32) -> (i32, i32) {
    %c0_i32 = arith.constant 0 : i32
    %c0_i32_0 = arith.constant 0 : i32
    return %arg0, %c0_i32 : i32, i32
  }
}

module attributes {stable_mosaic.version = 11 : i64} {
  func.func @_mm_kernel(%arg0: i32, %arg1: memref<32x256xbf16, #tpu.memory_space<vmem>>, %arg2: memref<256x32xbf16, #tpu.memory_space<vmem>>, %arg3: memref<1x32xf32, #tpu.memory_space<vmem>>, %arg4: memref<32x32xbf16, #tpu.memory_space<vmem>>) attributes {dimension_semantics = [#tpu.dimension_semantics<parallel>], iteration_bounds = array<i64: 1>, scalar_prefetch = 0 : i64, scratch_operands = 0 : i64, tpu.core_type = #tpu.core_type<tc>, window_params = [{transform_indices = @transform_0, window_bounds = array<i64: 32, 256>}, {pipeline_mode = #tpu.pipeline_mode<synchronous>, transform_indices = @transform_1, window_bounds = array<i64: 256, 32>}, {pipeline_mode = #tpu.pipeline_mode<synchronous>, transform_indices = @transform_2, window_bounds = array<i64: 1, 32>}, {transform_indices = @transform_3, window_bounds = array<i64: 32, 32>}]} {
    %c0 = arith.constant 0 : index
    %c0_0 = arith.constant 0 : index
    %0 = vector.load %arg1[%c0, %c0_0] : memref<32x256xbf16, #tpu.memory_space<vmem>>, vector<32x256xbf16>
    %c0_1 = arith.constant 0 : index
    %c0_2 = arith.constant 0 : index
    %1 = vector.load %arg2[%c0_1, %c0_2] : memref<256x32xbf16, #tpu.memory_space<vmem>>, vector<256x32xbf16>
    %cst = arith.constant dense<0.000000e+00> : vector<32x32xf32>
    %2 = tpu.matmul %0, %1, %cst {dimension_numbers = #tpu.dot_dimension_numbers<[1], [0], [0], [1], [0, 0, 1, 1], [], []>} : vector<32x256xbf16>, vector<256x32xbf16>, vector<32x32xf32> -> vector<32x32xf32>
    %c0_3 = arith.constant 0 : index
    %c0_4 = arith.constant 0 : index
    %3 = vector.load %arg3[%c0_3, %c0_4] : memref<1x32xf32, #tpu.memory_space<vmem>>, vector<1x32xf32>
    %4 = vector.broadcast %3 : vector<1x32xf32> to vector<32x32xf32>
    %5 = arith.addf %2, %4 : vector<32x32xf32>
    %cst_5 = arith.constant 0.000000e+00 : f32
    %6 = vector.broadcast %cst_5 : f32 to vector<32x32xf32>
    %7 = arith.maximumf %5, %6 : vector<32x32xf32>
    %8 = arith.truncf %7 : vector<32x32xf32> to vector<32x32xbf16>
    %c0_6 = arith.constant 0 : index
    %c0_7 = arith.constant 0 : index
    %9 = vector.load %arg4[%c0_6, %c0_7] : memref<32x32xbf16, #tpu.memory_space<vmem>>, vector<32x32xbf16>
    tpu.vector_store %arg4[%c0_6, %c0_7], %8 {strides = array<i32>} : memref<32x32xbf16, #tpu.memory_space<vmem>>, vector<32x32xbf16>,
    return
  }
  func.func @transform_0(%arg0: i32) -> (i32, i32) {
    %c0_i32 = arith.constant 0 : i32
    %c0_i32_0 = arith.constant 0 : i32
    return %arg0, %c0_i32 : i32, i32
  }
  func.func @transform_1(%arg0: i32) -> (i32, i32) {
    %c0_i32 = arith.constant 0 : i32
    %c0_i32_0 = arith.constant 0 : i32
    %c0_i32_1 = arith.constant 0 : i32
    return %c0_i32, %c0_i32_0 : i32, i32
  }
  func.func @transform_2(%arg0: i32) -> (i32, i32) {
    %c0_i32 = arith.constant 0 : i32
    %c0_i32_0 = arith.constant 0 : i32
    %c0_i32_1 = arith.constant 0 : i32
    return %c0_i32, %c0_i32_0 : i32, i32
  }
  func.func @transform_3(%arg0: i32) -> (i32, i32) {
    %c0_i32 = arith.constant 0 : i32
    %c0_i32_0 = arith.constant 0 : i32
    return %arg0, %c0_i32 : i32, i32
  }
}

module attributes {stable_mosaic.version = 11 : i64} {
  func.func @_mm_kernel(%arg0: i32, %arg1: memref<32x288xbf16, #tpu.memory_space<vmem>>, %arg2: memref<288x32xbf16, #tpu.memory_space<vmem>>, %arg3: memref<1x32xf32, #tpu.memory_space<vmem>>, %arg4: memref<32x32xbf16, #tpu.memory_space<vmem>>) attributes {dimension_semantics = [#tpu.dimension_semantics<parallel>], iteration_bounds = array<i64: 1>, scalar_prefetch = 0 : i64, scratch_operands = 0 : i64, tpu.core_type = #tpu.core_type<tc>, window_params = [{transform_indices = @transform_0, window_bounds = array<i64: 32, 288>}, {pipeline_mode = #tpu.pipeline_mode<synchronous>, transform_indices = @transform_1, window_bounds = array<i64: 288, 32>}, {pipeline_mode = #tpu.pipeline_mode<synchronous>, transform_indices = @transform_2, window_bounds = array<i64: 1, 32>}, {transform_indices = @transform_3, window_bounds = array<i64: 32, 32>}]} {
    %c0 = arith.constant 0 : index
    %c0_0 = arith.constant 0 : index
    %0 = vector.load %arg1[%c0, %c0_0] : memref<32x288xbf16, #tpu.memory_space<vmem>>, vector<32x288xbf16>
    %c0_1 = arith.constant 0 : index
    %c0_2 = arith.constant 0 : index
    %1 = vector.load %arg2[%c0_1, %c0_2] : memref<288x32xbf16, #tpu.memory_space<vmem>>, vector<288x32xbf16>
    %cst = arith.constant dense<0.000000e+00> : vector<32x32xf32>
    %2 = tpu.matmul %0, %1, %cst {dimension_numbers = #tpu.dot_dimension_numbers<[1], [0], [0], [1], [0, 0, 1, 1], [], []>} : vector<32x288xbf16>, vector<288x32xbf16>, vector<32x32xf32> -> vector<32x32xf32>
    %c0_3 = arith.constant 0 : index
    %c0_4 = arith.constant 0 : index
    %3 = vector.load %arg3[%c0_3, %c0_4] : memref<1x32xf32, #tpu.memory_space<vmem>>, vector<1x32xf32>
    %4 = vector.broadcast %3 : vector<1x32xf32> to vector<32x32xf32>
    %5 = arith.addf %2, %4 : vector<32x32xf32>
    %6 = arith.truncf %5 : vector<32x32xf32> to vector<32x32xbf16>
    %c0_5 = arith.constant 0 : index
    %c0_6 = arith.constant 0 : index
    %7 = vector.load %arg4[%c0_5, %c0_6] : memref<32x32xbf16, #tpu.memory_space<vmem>>, vector<32x32xbf16>
    tpu.vector_store %arg4[%c0_5, %c0_6], %6 {strides = array<i32>} : memref<32x32xbf16, #tpu.memory_space<vmem>>, vector<32x32xbf16>,
    return
  }
  func.func @transform_0(%arg0: i32) -> (i32, i32) {
    %c0_i32 = arith.constant 0 : i32
    %c0_i32_0 = arith.constant 0 : i32
    return %arg0, %c0_i32 : i32, i32
  }
  func.func @transform_1(%arg0: i32) -> (i32, i32) {
    %c0_i32 = arith.constant 0 : i32
    %c0_i32_0 = arith.constant 0 : i32
    %c0_i32_1 = arith.constant 0 : i32
    return %c0_i32, %c0_i32_0 : i32, i32
  }
  func.func @transform_2(%arg0: i32) -> (i32, i32) {
    %c0_i32 = arith.constant 0 : i32
    %c0_i32_0 = arith.constant 0 : i32
    %c0_i32_1 = arith.constant 0 : i32
    return %c0_i32, %c0_i32_0 : i32, i32
  }
  func.func @transform_3(%arg0: i32) -> (i32, i32) {
    %c0_i32 = arith.constant 0 : i32
    %c0_i32_0 = arith.constant 0 : i32
    return %arg0, %c0_i32 : i32, i32
  }
}

module attributes {stable_mosaic.version = 11 : i64} {
  func.func @_resblock_kernel(%arg0: i32, %arg1: memref<32x288xbf16, #tpu.memory_space<vmem>>, %arg2: memref<288x8xbf16, #tpu.memory_space<vmem>>, %arg3: memref<1x8xf32, #tpu.memory_space<vmem>>, %arg4: memref<8x32xbf16, #tpu.memory_space<vmem>>, %arg5: memref<1x32xf32, #tpu.memory_space<vmem>>, %arg6: memref<32x32xbf16, #tpu.memory_space<vmem>>, %arg7: memref<32x32xbf16, #tpu.memory_space<vmem>>) attributes {dimension_semantics = [#tpu.dimension_semantics<parallel>], iteration_bounds = array<i64: 1>, scalar_prefetch = 0 : i64, scratch_operands = 0 : i64, tpu.core_type = #tpu.core_type<tc>, window_params = [{transform_indices = @transform_0, window_bounds = array<i64: 32, 288>}, {pipeline_mode = #tpu.pipeline_mode<synchronous>, transform_indices = @transform_1, window_bounds = array<i64: 288, 8>}, {pipeline_mode = #tpu.pipeline_mode<synchronous>, transform_indices = @transform_2, window_bounds = array<i64: 1, 8>}, {pipeline_mode = #tpu.pipeline_mode<synchronous>, transform_indices = @transform_3, window_bounds = array<i64: 8, 32>}, {pipeline_mode = #tpu.pipeline_mode<synchronous>, transform_indices = @transform_4, window_bounds = array<i64: 1, 32>}, {transform_indices = @transform_5, window_bounds = array<i64: 32, 32>}, {transform_indices = @transform_6, window_bounds = array<i64: 32, 32>}]} {
    %c0 = arith.constant 0 : index
    %c0_0 = arith.constant 0 : index
    %0 = vector.load %arg1[%c0, %c0_0] : memref<32x288xbf16, #tpu.memory_space<vmem>>, vector<32x288xbf16>
    %cst = arith.constant 0.000000e+00 : bf16
    %1 = vector.broadcast %cst : bf16 to vector<32x288xbf16>
    %2 = arith.maximumf %0, %1 : vector<32x288xbf16>
    %c0_1 = arith.constant 0 : index
    %c0_2 = arith.constant 0 : index
    %3 = vector.load %arg2[%c0_1, %c0_2] : memref<288x8xbf16, #tpu.memory_space<vmem>>, vector<288x8xbf16>
    %cst_3 = arith.constant dense<0.000000e+00> : vector<32x8xf32>
    %4 = tpu.matmul %2, %3, %cst_3 {dimension_numbers = #tpu.dot_dimension_numbers<[1], [0], [0], [1], [0, 0, 1, 1], [], []>} : vector<32x288xbf16>, vector<288x8xbf16>, vector<32x8xf32> -> vector<32x8xf32>
    %c0_4 = arith.constant 0 : index
    %c0_5 = arith.constant 0 : index
    %5 = vector.load %arg3[%c0_4, %c0_5] : memref<1x8xf32, #tpu.memory_space<vmem>>, vector<1x8xf32>
    %6 = vector.broadcast %5 : vector<1x8xf32> to vector<32x8xf32>
    %7 = arith.addf %4, %6 : vector<32x8xf32>
    %cst_6 = arith.constant 0.000000e+00 : f32
    %8 = vector.broadcast %cst_6 : f32 to vector<32x8xf32>
    %9 = arith.maximumf %7, %8 : vector<32x8xf32>
    %10 = arith.truncf %9 : vector<32x8xf32> to vector<32x8xbf16>
    %c0_7 = arith.constant 0 : index
    %c0_8 = arith.constant 0 : index
    %11 = vector.load %arg4[%c0_7, %c0_8] : memref<8x32xbf16, #tpu.memory_space<vmem>>, vector<8x32xbf16>
    %cst_9 = arith.constant dense<0.000000e+00> : vector<32x32xf32>
    %12 = tpu.matmul %10, %11, %cst_9 {dimension_numbers = #tpu.dot_dimension_numbers<[1], [0], [0], [1], [0, 0, 1, 1], [], []>} : vector<32x8xbf16>, vector<8x32xbf16>, vector<32x32xf32> -> vector<32x32xf32>
    %c0_10 = arith.constant 0 : index
    %c0_11 = arith.constant 0 : index
    %13 = vector.load %arg5[%c0_10, %c0_11] : memref<1x32xf32, #tpu.memory_space<vmem>>, vector<1x32xf32>
    %14 = vector.broadcast %13 : vector<1x32xf32> to vector<32x32xf32>
    %15 = arith.addf %12, %14 : vector<32x32xf32>
    %c0_12 = arith.constant 0 : index
    %c0_13 = arith.constant 0 : index
    %16 = vector.load %arg6[%c0_12, %c0_13] : memref<32x32xbf16, #tpu.memory_space<vmem>>, vector<32x32xbf16>
    %17 = arith.extf %16 : vector<32x32xbf16> to vector<32x32xf32>
    %18 = arith.addf %15, %17 : vector<32x32xf32>
    %19 = arith.truncf %18 : vector<32x32xf32> to vector<32x32xbf16>
    %c0_14 = arith.constant 0 : index
    %c0_15 = arith.constant 0 : index
    %20 = vector.load %arg7[%c0_14, %c0_15] : memref<32x32xbf16, #tpu.memory_space<vmem>>, vector<32x32xbf16>
    tpu.vector_store %arg7[%c0_14, %c0_15], %19 {strides = array<i32>} : memref<32x32xbf16, #tpu.memory_space<vmem>>, vector<32x32xbf16>,
    return
  }
  func.func @transform_0(%arg0: i32) -> (i32, i32) {
    %c0_i32 = arith.constant 0 : i32
    %c0_i32_0 = arith.constant 0 : i32
    return %arg0, %c0_i32 : i32, i32
  }
  func.func @transform_1(%arg0: i32) -> (i32, i32) {
    %c0_i32 = arith.constant 0 : i32
    %c0_i32_0 = arith.constant 0 : i32
    %c0_i32_1 = arith.constant 0 : i32
    return %c0_i32, %c0_i32_0 : i32, i32
  }
  func.func @transform_2(%arg0: i32) -> (i32, i32) {
    %c0_i32 = arith.constant 0 : i32
    %c0_i32_0 = arith.constant 0 : i32
    %c0_i32_1 = arith.constant 0 : i32
    return %c0_i32, %c0_i32_0 : i32, i32
  }
  func.func @transform_3(%arg0: i32) -> (i32, i32) {
    %c0_i32 = arith.constant 0 : i32
    %c0_i32_0 = arith.constant 0 : i32
    %c0_i32_1 = arith.constant 0 : i32
    return %c0_i32, %c0_i32_0 : i32, i32
  }
  func.func @transform_4(%arg0: i32) -> (i32, i32) {
    %c0_i32 = arith.constant 0 : i32
    %c0_i32_0 = arith.constant 0 : i32
    %c0_i32_1 = arith.constant 0 : i32
    return %c0_i32, %c0_i32_0 : i32, i32
  }
  func.func @transform_5(%arg0: i32) -> (i32, i32) {
    %c0_i32 = arith.constant 0 : i32
    %c0_i32_0 = arith.constant 0 : i32
    return %arg0, %c0_i32 : i32, i32
  }
  func.func @transform_6(%arg0: i32) -> (i32, i32) {
    %c0_i32 = arith.constant 0 : i32
    %c0_i32_0 = arith.constant 0 : i32
    return %arg0, %c0_i32 : i32, i32
  }
}

module attributes {stable_mosaic.version = 11 : i64} {
  func.func @_mm_kernel(%arg0: i32, %arg1: memref<32x32xbf16, #tpu.memory_space<vmem>>, %arg2: memref<32x32xbf16, #tpu.memory_space<vmem>>, %arg3: memref<1x32xf32, #tpu.memory_space<vmem>>, %arg4: memref<32x32xbf16, #tpu.memory_space<vmem>>) attributes {dimension_semantics = [#tpu.dimension_semantics<parallel>], iteration_bounds = array<i64: 1>, scalar_prefetch = 0 : i64, scratch_operands = 0 : i64, tpu.core_type = #tpu.core_type<tc>, window_params = [{transform_indices = @transform_0, window_bounds = array<i64: 32, 32>}, {pipeline_mode = #tpu.pipeline_mode<synchronous>, transform_indices = @transform_1, window_bounds = array<i64: 32, 32>}, {pipeline_mode = #tpu.pipeline_mode<synchronous>, transform_indices = @transform_2, window_bounds = array<i64: 1, 32>}, {transform_indices = @transform_3, window_bounds = array<i64: 32, 32>}]} {
    %c0 = arith.constant 0 : index
    %c0_0 = arith.constant 0 : index
    %0 = vector.load %arg1[%c0, %c0_0] : memref<32x32xbf16, #tpu.memory_space<vmem>>, vector<32x32xbf16>
    %cst = arith.constant 0.000000e+00 : bf16
    %1 = vector.broadcast %cst : bf16 to vector<32x32xbf16>
    %2 = arith.maximumf %0, %1 : vector<32x32xbf16>
    %c0_1 = arith.constant 0 : index
    %c0_2 = arith.constant 0 : index
    %3 = vector.load %arg2[%c0_1, %c0_2] : memref<32x32xbf16, #tpu.memory_space<vmem>>, vector<32x32xbf16>
    %cst_3 = arith.constant dense<0.000000e+00> : vector<32x32xf32>
    %4 = tpu.matmul %2, %3, %cst_3 {dimension_numbers = #tpu.dot_dimension_numbers<[1], [0], [0], [1], [0, 0, 1, 1], [], []>} : vector<32x32xbf16>, vector<32x32xbf16>, vector<32x32xf32> -> vector<32x32xf32>
    %c0_4 = arith.constant 0 : index
    %c0_5 = arith.constant 0 : index
    %5 = vector.load %arg3[%c0_4, %c0_5] : memref<1x32xf32, #tpu.memory_space<vmem>>, vector<1x32xf32>
    %6 = vector.broadcast %5 : vector<1x32xf32> to vector<32x32xf32>
    %7 = arith.addf %4, %6 : vector<32x32xf32>
    %cst_6 = arith.constant 0.000000e+00 : f32
    %8 = vector.broadcast %cst_6 : f32 to vector<32x32xf32>
    %9 = arith.maximumf %7, %8 : vector<32x32xf32>
    %10 = arith.truncf %9 : vector<32x32xf32> to vector<32x32xbf16>
    %c0_7 = arith.constant 0 : index
    %c0_8 = arith.constant 0 : index
    %11 = vector.load %arg4[%c0_7, %c0_8] : memref<32x32xbf16, #tpu.memory_space<vmem>>, vector<32x32xbf16>
    tpu.vector_store %arg4[%c0_7, %c0_8], %10 {strides = array<i32>} : memref<32x32xbf16, #tpu.memory_space<vmem>>, vector<32x32xbf16>,
    return
  }
  func.func @transform_0(%arg0: i32) -> (i32, i32) {
    %c0_i32 = arith.constant 0 : i32
    %c0_i32_0 = arith.constant 0 : i32
    return %arg0, %c0_i32 : i32, i32
  }
  func.func @transform_1(%arg0: i32) -> (i32, i32) {
    %c0_i32 = arith.constant 0 : i32
    %c0_i32_0 = arith.constant 0 : i32
    %c0_i32_1 = arith.constant 0 : i32
    return %c0_i32, %c0_i32_0 : i32, i32
  }
  func.func @transform_2(%arg0: i32) -> (i32, i32) {
    %c0_i32 = arith.constant 0 : i32
    %c0_i32_0 = arith.constant 0 : i32
    %c0_i32_1 = arith.constant 0 : i32
    return %c0_i32, %c0_i32_0 : i32, i32
  }
  func.func @transform_3(%arg0: i32) -> (i32, i32) {
    %c0_i32 = arith.constant 0 : i32
    %c0_i32_0 = arith.constant 0 : i32
    return %arg0, %c0_i32 : i32, i32
  }
}

module attributes {stable_mosaic.version = 11 : i64} {
  func.func @_mm_kernel(%arg0: i32, %arg1: memref<16x512xbf16, #tpu.memory_space<vmem>>, %arg2: memref<512x32xbf16, #tpu.memory_space<vmem>>, %arg3: memref<1x32xf32, #tpu.memory_space<vmem>>, %arg4: memref<16x32xf32, #tpu.memory_space<vmem>>) attributes {dimension_semantics = [#tpu.dimension_semantics<parallel>], iteration_bounds = array<i64: 1>, scalar_prefetch = 0 : i64, scratch_operands = 0 : i64, tpu.core_type = #tpu.core_type<tc>, window_params = [{transform_indices = @transform_0, window_bounds = array<i64: 16, 512>}, {pipeline_mode = #tpu.pipeline_mode<synchronous>, transform_indices = @transform_1, window_bounds = array<i64: 512, 32>}, {pipeline_mode = #tpu.pipeline_mode<synchronous>, transform_indices = @transform_2, window_bounds = array<i64: 1, 32>}, {transform_indices = @transform_3, window_bounds = array<i64: 16, 32>}]} {
    %c0 = arith.constant 0 : index
    %c0_0 = arith.constant 0 : index
    %0 = vector.load %arg1[%c0, %c0_0] : memref<16x512xbf16, #tpu.memory_space<vmem>>, vector<16x512xbf16>
    %c0_1 = arith.constant 0 : index
    %c0_2 = arith.constant 0 : index
    %1 = vector.load %arg2[%c0_1, %c0_2] : memref<512x32xbf16, #tpu.memory_space<vmem>>, vector<512x32xbf16>
    %cst = arith.constant dense<0.000000e+00> : vector<16x32xf32>
    %2 = tpu.matmul %0, %1, %cst {dimension_numbers = #tpu.dot_dimension_numbers<[1], [0], [0], [1], [0, 0, 1, 1], [], []>} : vector<16x512xbf16>, vector<512x32xbf16>, vector<16x32xf32> -> vector<16x32xf32>
    %c0_3 = arith.constant 0 : index
    %c0_4 = arith.constant 0 : index
    %3 = vector.load %arg3[%c0_3, %c0_4] : memref<1x32xf32, #tpu.memory_space<vmem>>, vector<1x32xf32>
    %4 = vector.broadcast %3 : vector<1x32xf32> to vector<16x32xf32>
    %5 = arith.addf %2, %4 : vector<16x32xf32>
    %c0_5 = arith.constant 0 : index
    %c0_6 = arith.constant 0 : index
    %6 = vector.load %arg4[%c0_5, %c0_6] : memref<16x32xf32, #tpu.memory_space<vmem>>, vector<16x32xf32>
    tpu.vector_store %arg4[%c0_5, %c0_6], %5 {strides = array<i32>} : memref<16x32xf32, #tpu.memory_space<vmem>>, vector<16x32xf32>,
    return
  }
  func.func @transform_0(%arg0: i32) -> (i32, i32) {
    %c0_i32 = arith.constant 0 : i32
    %c0_i32_0 = arith.constant 0 : i32
    return %arg0, %c0_i32 : i32, i32
  }
  func.func @transform_1(%arg0: i32) -> (i32, i32) {
    %c0_i32 = arith.constant 0 : i32
    %c0_i32_0 = arith.constant 0 : i32
    %c0_i32_1 = arith.constant 0 : i32
    return %c0_i32, %c0_i32_0 : i32, i32
  }
  func.func @transform_2(%arg0: i32) -> (i32, i32) {
    %c0_i32 = arith.constant 0 : i32
    %c0_i32_0 = arith.constant 0 : i32
    %c0_i32_1 = arith.constant 0 : i32
    return %c0_i32, %c0_i32_0 : i32, i32
  }
  func.func @transform_3(%arg0: i32) -> (i32, i32) {
    %c0_i32 = arith.constant 0 : i32
    %c0_i32_0 = arith.constant 0 : i32
    return %arg0, %c0_i32 : i32, i32
  }
}

</mosaic_0001>

<bundles_post_ra>
// kernel: vae_encoder_forward.7
= control target key start
LH: loop header
LB: loop body
LE: loop exit
PB: predicated region body
PF: predicated region fallthrough
CT: control target
= control target key end

     0   :  { %vm99_vm0 = vcmask 392192   ;;  %vm205_vm1 = vcmask 125952   ;;  %s445_s1 = inlined_call_operand.vmem [shape: bf16[48,16], index: 1, kind: input, shape index: {}]   ;;  %s446_s2 = inlined_call_operand.vmem [shape: f32[1,16], index: 2, kind: input, shape index: {}]   ;;  %s447_s0 = inlined_call_operand.vmem [shape: bf16[128,48], index: 0, kind: input, shape index: {}]   ;;  %s448_s3 = inlined_call_operand.vmem [shape: bf16[128,16], index: 3, kind: output, shape index: {}]  }
   0x1   :  { %v288_v0 = vld [vmem:[%s445_s1 + $0x10] sm:$0xff]  ;;  %v287_v1 = vld [vmem:[%s445_s1 + $0x8] sm:$0xff]  ;;  %v286_v2 = vld [vmem:[%s445_s1] sm:$0xff] }
   0x2   :  { %129 = vmatpush.bf16.msra.mxu0 %v288_v0  ;;  %289 = vmatpush.bf16.msra.mxu1 %v288_v0  ;;  %v278_v3 = vld [vmem:[%s447_s0] sm:$0xff]  ;;  %v280_v4 = vld [vmem:[%s447_s0 + $0x10] sm:$0xff]  ;;  %v279_v7 = vld [vmem:[%s447_s0 + $0x8] sm:$0xff] }
   0x3   :  { %290 = vmatpush.bf16.msra.mxu2 %v288_v0  ;;  %291 = vmatpush.bf16.msra.mxu3 %v288_v0  ;;  %v282_v5 = vld [vmem:[%s447_s0 + $0x20] sm:$0xff]  ;;  %v284_v6 = vld [vmem:[%s447_s0 + $0x30] sm:$0xff]  ;;  %v281_v8 = vld [vmem:[%s447_s0 + $0x18] sm:$0xff] }
   0x4   :  { %v283_v9 = vld [vmem:[%s447_s0 + $0x28] sm:$0xff]  ;;  %v285_v10 = vld [vmem:[%s447_s0 + $0x38] sm:$0xff]  ;;  %v363_v11 = vld [vmem:[%s446_s2] ss:$0 sm:$0xff] }
   0x6   :  { %130 = vmatpush.bf16.msra.mxu0 %v287_v1  ;;  %292 = vmatpush.bf16.msra.mxu1 %v287_v1 }
   0x7   :  { %293 = vmatpush.bf16.msra.mxu2 %v287_v1  ;;  %294 = vmatpush.bf16.msra.mxu3 %v287_v1 }
   0xa   :  { %131 = vmatpush.bf16.msra.mxu0 %v286_v2  ;;  %295 = vmatpush.bf16.msra.mxu1 %v286_v2 }
   0xb   :  { %296 = vmatpush.bf16.msra.mxu2 %v286_v2  ;;  %297 = vmatpush.bf16.msra.mxu3 %v286_v2 }
   0xd   :  { %270 = vmatmul.msk.bf16.vlgmr.msra.gmra.mxu0 %vm99_vm0, %v278_v3  ;;  %272 = vmatmul.msk.bf16.vlgmr.msra.gmra.mxu1 %vm99_vm0, %v280_v4 }
   0xe   :  { %274 = vmatmul.msk.bf16.vlgmr.msra.gmra.mxu2 %vm99_vm0, %v282_v5  ;;  %276 = vmatmul.msk.bf16.vlgmr.msra.gmra.mxu3 %vm99_vm0, %v284_v6 }
  0x1d   :  { %271 = vmatmul.msk.bf16.gmra.mxu0 %vm99_vm0, %v279_v7  ;;  %273 = vmatmul.msk.bf16.gmra.mxu1 %vm99_vm0, %v281_v8 }
  0x1e   :  { %275 = vmatmul.msk.bf16.gmra.mxu2 %vm99_vm0, %v283_v9  ;;  %277 = vmatmul.msk.bf16.gmra.mxu3 %vm99_vm0, %v285_v10 }
  0x8a   :  { %v133_v12 = vpop.f32.mrf.mxu0  ;;  %v143_v13 = vpop.f32.mrf.mxu1 }
  0x8b   :  { %v134_v14 = vadd.f32 %v363_v11, %v133_v12  ;;  %v144_v15 = vadd.f32 %v363_v11, %v143_v13 }
  0x8d   :  { %v173_v16 = vmax.f32 %v134_v14, 0.0  ;;  %v177_v17 = vmax.f32 %v144_v15, 0.0 }
  0x8f   :  { %v189_v18 = vpack.c.bf16 %v173_v16, %v173_v16  ;;  %v193_v19 = vpack.c.bf16 %v177_v17, %v177_v17 }
  0x91   :  { %206 = vst.msk [vmem:[%s448_s3] sm:$0xf] %vm205_vm1, %v189_v18  ;;  %v153_v20 = vpop.f32.mrf.mxu2  ;;  %v163_v21 = vpop.f32.mrf.mxu3 }
  0x92   :  { %210 = vst.msk [vmem:[%s448_s3 + $0x10] sm:$0xf] %vm205_vm1, %v193_v19  ;;  %v154_v22 = vadd.f32 %v363_v11, %v153_v20  ;;  %v164_v23 = vadd.f32 %v363_v11, %v163_v21  ;;  %v135_v24 = vpop.f32.mrf.mxu0  ;;  %v145_v25 = vpop.f32.mrf.mxu1 }
  0x93   :  { %v136_v26 = vadd.f32 %v363_v11, %v135_v24  ;;  %v146_v27 = vadd.f32 %v363_v11, %v145_v25 }
  0x94   :  { %v181_v28 = vmax.f32 %v154_v22, 0.0  ;;  %v185_v29 = vmax.f32 %v164_v23, 0.0 }
  0x95   :  { %v174_v30 = vmax.f32 %v136_v26, 0.0  ;;  %v178_v31 = vmax.f32 %v146_v27, 0.0 }
  0x96   :  { %v197_v32 = vpack.c.bf16 %v181_v28, %v181_v28  ;;  %v201_v33 = vpack.c.bf16 %v185_v29, %v185_v29 }
  0x97   :  { %v190_v34 = vpack.c.bf16 %v174_v30, %v174_v30  ;;  %v194_v35 = vpack.c.bf16 %v178_v31, %v178_v31 }
  0x98   :  { %214 = vst.msk [vmem:[%s448_s3 + $0x20] sm:$0xf] %vm205_vm1, %v197_v32 }
  0x99   :  { %218 = vst.msk [vmem:[%s448_s3 + $0x30] sm:$0xf] %vm205_vm1, %v201_v33  ;;  %v155_v36 = vpop.f32.mrf.mxu2  ;;  %v165_v37 = vpop.f32.mrf.mxu3 }
  0x9a   :  { %207 = vst.msk [vmem:[%s448_s3 + $0x4] sm:$0xf] %vm205_vm1, %v190_v34  ;;  %v156_v38 = vadd.f32 %v363_v11, %v155_v36  ;;  %v166_v39 = vadd.f32 %v363_v11, %v165_v37  ;;  %v138_v40 = vpop.f32.mrf.mxu0  ;;  %v148_v41 = vpop.f32.mrf.mxu1 }
  0x9b   :  { %211 = vst.msk [vmem:[%s448_s3 + $0x14] sm:$0xf] %vm205_vm1, %v194_v35  ;;  %v139_v42 = vadd.f32 %v363_v11, %v138_v40  ;;  %v149_v43 = vadd.f32 %v363_v11, %v148_v41 }
  0x9c   :  { %v182_v44 = vmax.f32 %v156_v38, 0.0  ;;  %v186_v45 = vmax.f32 %v166_v39, 0.0 }
  0x9d   :  { %v175_v46 = vmax.f32 %v139_v42, 0.0  ;;  %v179_v47 = vmax.f32 %v149_v43, 0.0 }
  0x9e   :  { %v198_v48 = vpack.c.bf16 %v182_v44, %v182_v44  ;;  %v202_v49 = vpack.c.bf16 %v186_v45, %v186_v45 }
  0x9f   :  { %v191_v50 = vpack.c.bf16 %v175_v46, %v175_v46  ;;  %v195_v51 = vpack.c.bf16 %v179_v47, %v179_v47 }
  0xa0   :  { %215 = vst.msk [vmem:[%s448_s3 + $0x24] sm:$0xf] %vm205_vm1, %v198_v48 }
  0xa1   :  { %219 = vst.msk [vmem:[%s448_s3 + $0x34] sm:$0xf] %vm205_vm1, %v202_v49  ;;  %v158_v52 = vpop.f32.mrf.mxu2  ;;  %v168_v53 = vpop.f32.mrf.mxu3 }
  0xa2   :  { %208 = vst.msk [vmem:[%s448_s3 + $0x8] sm:$0xf] %vm205_vm1, %v191_v50  ;;  %v159_v54 = vadd.f32 %v363_v11, %v158_v52  ;;  %v169_v55 = vadd.f32 %v363_v11, %v168_v53  ;;  %v140_v56 = vpop.f32.mrf.mxu0  ;;  %v150_v57 = vpop.f32.mrf.mxu1 }
  0xa3   :  { %212 = vst.msk [vmem:[%s448_s3 + $0x18] sm:$0xf] %vm205_vm1, %v195_v51  ;;  %v141_v58 = vadd.f32 %v363_v11, %v140_v56  ;;  %v151_v59 = vadd.f32 %v363_v11, %v150_v57 }
  0xa4   :  { %v183_v60 = vmax.f32 %v159_v54, 0.0  ;;  %v187_v61 = vmax.f32 %v169_v55, 0.0 }
  0xa5   :  { %v176_v62 = vmax.f32 %v141_v58, 0.0  ;;  %v180_v63 = vmax.f32 %v151_v59, 0.0 }
  0xa6   :  { %v199_v0 = vpack.c.bf16 %v183_v60, %v183_v60  ;;  %v203_v1 = vpack.c.bf16 %v187_v61, %v187_v61 }
  0xa7   :  { %v192_v2 = vpack.c.bf16 %v176_v62, %v176_v62  ;;  %v196_v3 = vpack.c.bf16 %v180_v63, %v180_v63 }
  0xa8   :  { %216 = vst.msk [vmem:[%s448_s3 + $0x28] sm:$0xf] %vm205_vm1, %v199_v0 }
  0xa9   :  { %220 = vst.msk [vmem:[%s448_s3 + $0x38] sm:$0xf] %vm205_vm1, %v203_v1  ;;  %v160_v4 = vpop.f32.mrf.mxu2  ;;  %v170_v5 = vpop.f32.mrf.mxu3 }
  0xaa   :  { %209 = vst.msk [vmem:[%s448_s3 + $0xc] sm:$0xf] %vm205_vm1, %v192_v2  ;;  %v161_v6 = vadd.f32 %v363_v11, %v160_v4  ;;  %v171_v7 = vadd.f32 %v363_v11, %v170_v5 }
  0xab   :  { %213 = vst.msk [vmem:[%s448_s3 + $0x1c] sm:$0xf] %vm205_vm1, %v196_v3 }
  0xac   :  { %v184_v8 = vmax.f32 %v161_v6, 0.0  ;;  %v188_v9 = vmax.f32 %v171_v7, 0.0 }
  0xae   :  { %v200_v10 = vpack.c.bf16 %v184_v8, %v184_v8  ;;  %v204_v12 = vpack.c.bf16 %v188_v9, %v188_v9 }
  0xb0   :  { %217 = vst.msk [vmem:[%s448_s3 + $0x2c] sm:$0xf] %vm205_vm1, %v200_v10 }
  0xb1   :  { %221 = vst.msk [vmem:[%s448_s3 + $0x3c] sm:$0xf] %vm205_vm1, %v204_v12 }

// kernel: vae_encoder_forward.8
= control target key start
LH: loop header
LB: loop body
LE: loop exit
PB: predicated region body
PF: predicated region fallthrough
CT: control target
= control target key end

     0   :  { %vm216_vm0 = vcmask 257024   ;;  %s453_s1 = inlined_call_operand.vmem [shape: bf16[256,32], index: 1, kind: input, shape index: {}]   ;;  %s454_s2 = inlined_call_operand.vmem [shape: f32[1,32], index: 2, kind: input, shape index: {}]   ;;  %s455_s0 = inlined_call_operand.vmem [shape: bf16[32,256], index: 0, kind: input, shape index: {}]   ;;  %s456_s3 = inlined_call_operand.vmem [shape: bf16[32,32], index: 3, kind: output, shape index: {}]  }
   0x1   :  { %v316_v0 = vld [vmem:[%s453_s1 + $0x38] sm:$0xff]  ;;  %v315_v2 = vld [vmem:[%s453_s1 + $0x30] sm:$0xff]  ;;  %v314_v4 = vld [vmem:[%s453_s1 + $0x28] sm:$0xff] }
   0x2   :  { %v324_v1 = vld [vmem:[%s453_s1 + $0x78] sm:$0xff]  ;;  %170 = vmatpush.bf16.msra.mxu0 %v316_v0  ;;  %325 = vmatpush.bf16.msra.mxu2 %v316_v0  ;;  %v323_v3 = vld [vmem:[%s453_s1 + $0x70] sm:$0xff]  ;;  %v322_v5 = vld [vmem:[%s453_s1 + $0x68] sm:$0xff] }
   0x3   :  { %189 = vmatpush.bf16.msra.mxu1 %v324_v1  ;;  %333 = vmatpush.bf16.msra.mxu3 %v324_v1  ;;  %v313_v6 = vld [vmem:[%s453_s1 + $0x20] sm:$0xff]  ;;  %v312_v8 = vld [vmem:[%s453_s1 + $0x18] sm:$0xff]  ;;  %v311_v10 = vld [vmem:[%s453_s1 + $0x10] sm:$0xff] }
   0x4   :  { %v321_v7 = vld [vmem:[%s453_s1 + $0x60] sm:$0xff]  ;;  %v320_v9 = vld [vmem:[%s453_s1 + $0x58] sm:$0xff]  ;;  %v319_v11 = vld [vmem:[%s453_s1 + $0x50] sm:$0xff] }
   0x5   :  { %v310_v12 = vld [vmem:[%s453_s1 + $0x8] sm:$0xff]  ;;  %v309_v14 = vld [vmem:[%s453_s1] sm:$0xff]  ;;  %v235_v18 = vld [vmem:[%s455_s0 + $0x10] sm:$0xf] }
   0x6   :  { %171 = vmatpush.bf16.msra.mxu0 %v315_v2  ;;  %326 = vmatpush.bf16.msra.mxu2 %v315_v2  ;;  %v318_v13 = vld [vmem:[%s453_s1 + $0x48] sm:$0xff]  ;;  %v317_v15 = vld [vmem:[%s453_s1 + $0x40] sm:$0xff]  ;;  %v308_v19 = vld [vmem:[%s455_s0 + $0x14] sm:$0xf0] }
   0x7   :  { %190 = vmatpush.bf16.msra.mxu1 %v323_v3  ;;  %334 = vmatpush.bf16.msra.mxu3 %v323_v3  ;;  %v227_v16 = vld [vmem:[%s455_s0] sm:$0xf]  ;;  %v306_v17 = vld [vmem:[%s455_s0 + $0x4] sm:$0xf0]  ;;  %v305_v20 = vld [vmem:[%s455_s0 + $0x4] sm:$0xf]  ;;  %v236_v25 = vor.u32 %v308_v19, %v235_v18 }
   0x8   :  { %v229_v21 = vld [vmem:[%s455_s0 + $0x8] sm:$0xf0]  ;;  %v307_v22 = vld [vmem:[%s455_s0 + $0x14] sm:$0xf]  ;;  %v237_v23 = vld [vmem:[%s455_s0 + $0x18] sm:$0xf0]  ;;  %v228_v24 = vor.u32 %v306_v17, %v227_v16 }
   0x9   :  { %v232_v26 = vor.u32 %v305_v20, %v229_v21  ;;  %v240_v27 = vor.u32 %v307_v22, %v237_v23  ;;  %v341_v28 = vld [vmem:[%s454_s2] ss:$0 sm:$0xff] }
   0xa   :  { %172 = vmatpush.bf16.msra.mxu0 %v314_v4  ;;  %327 = vmatpush.bf16.msra.mxu2 %v314_v4 }
   0xb   :  { %191 = vmatpush.bf16.msra.mxu1 %v322_v5  ;;  %335 = vmatpush.bf16.msra.mxu3 %v322_v5 }
   0xe   :  { %173 = vmatpush.bf16.msra.mxu0 %v313_v6  ;;  %328 = vmatpush.bf16.msra.mxu2 %v313_v6 }
   0xf   :  { %192 = vmatpush.bf16.msra.mxu1 %v321_v7  ;;  %336 = vmatpush.bf16.msra.mxu3 %v321_v7 }
  0x12   :  { %174 = vmatpush.bf16.msra.mxu0 %v312_v8  ;;  %329 = vmatpush.bf16.msra.mxu2 %v312_v8 }
  0x13   :  { %193 = vmatpush.bf16.msra.mxu1 %v320_v9  ;;  %337 = vmatpush.bf16.msra.mxu3 %v320_v9 }
  0x16   :  { %175 = vmatpush.bf16.msra.mxu0 %v311_v10  ;;  %330 = vmatpush.bf16.msra.mxu2 %v311_v10 }
  0x17   :  { %194 = vmatpush.bf16.msra.mxu1 %v319_v11  ;;  %338 = vmatpush.bf16.msra.mxu3 %v319_v11 }
  0x1a   :  { %176 = vmatpush.bf16.msra.mxu0 %v310_v12  ;;  %331 = vmatpush.bf16.msra.mxu2 %v310_v12 }
  0x1b   :  { %195 = vmatpush.bf16.msra.mxu1 %v318_v13  ;;  %339 = vmatpush.bf16.msra.mxu3 %v318_v13 }
  0x1e   :  { %177 = vmatpush.bf16.msra.mxu0 %v309_v14  ;;  %332 = vmatpush.bf16.msra.mxu2 %v309_v14 }
  0x1f   :  { %196 = vmatpush.bf16.msra.mxu1 %v317_v15  ;;  %340 = vmatpush.bf16.msra.mxu3 %v317_v15 }
  0x21   :  { %178 = vmatmul.bf16.vlgmr.msra.gmra.mxu0 %v228_v24  ;;  %183 = vmatmul.bf16.vlgmr.msra.gmra.mxu2 %v236_v25 }
  0x22   :  { %197 = vmatmul.bf16.vlgmr.msra.gmra.mxu1 %v232_v26  ;;  %202 = vmatmul.bf16.vlgmr.msra.gmra.mxu3 %v240_v27 }
  0x9e   :  { %v179_v29 = vpop.f32.mrf.mxu0 }
  0x9f   :  { %v180_v30 = vadd.f32 %v341_v28, %v179_v29  ;;  %v198_v31 = vpop.f32.mrf.mxu1 }
  0xa1   :  { %v199_v32 = vadd.f32 %v198_v31, %v180_v30 }
  0xa3   :  { %v208_v33 = vmax.f32 %v199_v32, 0.0 }
  0xa4   :  { %v184_v34 = vpop.f32.mrf.mxu2 }
  0xa5   :  { %v212_v35 = vpack.c.bf16 %v208_v33, %v208_v33  ;;  %v185_v36 = vadd.f32 %v341_v28, %v184_v34  ;;  %v203_v37 = vpop.f32.mrf.mxu3 }
  0xa6   :  { %v181_v38 = vpop.f32.mrf.mxu0 }
  0xa7   :  { %217 = vst.msk [vmem:[%s456_s3] sm:$0xf] %vm216_vm0, %v212_v35  ;;  %v204_v39 = vadd.f32 %v203_v37, %v185_v36  ;;  %v182_v40 = vadd.f32 %v341_v28, %v181_v38  ;;  %v200_v41 = vpop.f32.mrf.mxu1 }
  0xa9   :  { %v210_v42 = vmax.f32 %v204_v39, 0.0  ;;  %v201_v43 = vadd.f32 %v200_v41, %v182_v40 }
  0xab   :  { %v214_v44 = vpack.c.bf16 %v210_v42, %v210_v42  ;;  %v209_v45 = vmax.f32 %v201_v43, 0.0 }
  0xac   :  { %v186_v46 = vpop.f32.mrf.mxu2 }
  0xad   :  { %219 = vst.msk [vmem:[%s456_s3 + $0x8] sm:$0xf] %vm216_vm0, %v214_v44  ;;  %v213_v47 = vpack.c.bf16 %v209_v45, %v209_v45  ;;  %v187_v48 = vadd.f32 %v341_v28, %v186_v46  ;;  %v205_v49 = vpop.f32.mrf.mxu3 }
  0xaf   :  { %218 = vst.msk [vmem:[%s456_s3 + $0x4] sm:$0xf] %vm216_vm0, %v213_v47  ;;  %v206_v50 = vadd.f32 %v205_v49, %v187_v48 }
  0xb1   :  { %v211_v51 = vmax.f32 %v206_v50, 0.0 }
  0xb3   :  { %v215_v52 = vpack.c.bf16 %v211_v51, %v211_v51 }
  0xb5   :  { %220 = vst.msk [vmem:[%s456_s3 + $0xc] sm:$0xf] %vm216_vm0, %v215_v52 }

// kernel: vae_encoder_forward.12
= control target key start
LH: loop header
LB: loop body
LE: loop exit
PB: predicated region body
PF: predicated region fallthrough
CT: control target
= control target key end

     0   :  { %vm49_vm0 = vcmask 261120   ;;  %vm83_vm1 = vcmask 257024   ;;  %s163_s1 = inlined_call_operand.vmem [shape: bf16[32,32], index: 1, kind: input, shape index: {}]   ;;  %s164_s0 = inlined_call_operand.vmem [shape: bf16[32,32], index: 0, kind: input, shape index: {}]   ;;  %s165_s2 = inlined_call_operand.vmem [shape: f32[1,32], index: 2, kind: input, shape index: {}]   ;;  %s166_s3 = inlined_call_operand.vmem [shape: bf16[32,32], index: 3, kind: output, shape index: {}]  }
   0x1   :  { %v103_v0 = vld [vmem:[%s163_s1 + $0x8] sm:$0xff]  ;;  %v105_v1 = vld [vmem:[%s164_s0] sm:$0xff]  }
   0x2   :  { %v106_v2 = vunpack.c.l.bf16 %v105_v1  ;;  %v107_v3 = vunpack.c.h.bf16 %v105_v1  ;;  %v112_v4 = vld [vmem:[%s164_s0 + $0x8] sm:$0xff]   ;;  %62 = vmatpush.bf16.msra.mxu0 %v103_v0  ;;  %113 = vmatpush.bf16.msra.mxu1 %v103_v0  ;;  %v102_v5 = vld [vmem:[%s163_s1] sm:$0xff] }
   0x3   :  { %v110_v6 = vunpack.c.l.bf16 %v112_v4  ;;  %v111_v7 = vunpack.c.h.bf16 %v112_v4  ;;  %v115_v14 = vld [vmem:[%s165_s2] ss:$0 sm:$0xff] }
   0x4   :  { %v23_v8 = vmax.f32 %v106_v2, 0.0  ;;  %v24_v9 = vmax.f32 %v107_v3, 0.0 }
   0x5   :  { %v25_v10 = vmax.f32 %v110_v6, 0.0  ;;  %v26_v11 = vmax.f32 %v111_v7, 0.0 }
   0x6   :  { %v27_v12 = vpack.c.bf16 %v24_v9, %v23_v8  ;;  %63 = vmatpush.bf16.msra.mxu0 %v102_v5  ;;  %114 = vmatpush.bf16.msra.mxu1 %v102_v5 }
   0x7   :  { %v28_v13 = vpack.c.bf16 %v26_v11, %v25_v10 }
   0x9   :  { %100 = vmatmul.msk.bf16.vlgmr.msra.gmra.mxu0 %vm49_vm0, %v27_v12  ;;  %101 = vmatmul.msk.bf16.vlgmr.msra.gmra.mxu1 %vm49_vm0, %v28_v13 }
  0x86   :  { %v65_v15 = vpop.f32.mrf.mxu0  ;;  %v70_v16 = vpop.f32.mrf.mxu1 }
  0x87   :  { %v66_v17 = vadd.f32 %v115_v14, %v65_v15  ;;  %v71_v18 = vadd.f32 %v115_v14, %v70_v16 }
  0x89   :  { %v75_v19 = vmax.f32 %v66_v17, 0.0  ;;  %v77_v20 = vmax.f32 %v71_v18, 0.0 }
  0x8b   :  { %v79_v21 = vpack.c.bf16 %v75_v19, %v75_v19  ;;  %v81_v22 = vpack.c.bf16 %v77_v20, %v77_v20 }
  0x8d   :  { %84 = vst.msk [vmem:[%s166_s3] sm:$0xf] %vm83_vm1, %v79_v21 }
  0x8e   :  { %86 = vst.msk [vmem:[%s166_s3 + $0x8] sm:$0xf] %vm83_vm1, %v81_v22  ;;  %v67_v23 = vpop.f32.mrf.mxu0  ;;  %v72_v24 = vpop.f32.mrf.mxu1 }
  0x8f   :  { %v68_v25 = vadd.f32 %v115_v14, %v67_v23  ;;  %v73_v26 = vadd.f32 %v115_v14, %v72_v24 }
  0x91   :  { %v76_v27 = vmax.f32 %v68_v25, 0.0  ;;  %v78_v28 = vmax.f32 %v73_v26, 0.0 }
  0x93   :  { %v80_v29 = vpack.c.bf16 %v76_v27, %v76_v27  ;;  %v82_v30 = vpack.c.bf16 %v78_v28, %v78_v28 }
  0x95   :  { %85 = vst.msk [vmem:[%s166_s3 + $0x4] sm:$0xf] %vm83_vm1, %v80_v29 }
  0x96   :  { %87 = vst.msk [vmem:[%s166_s3 + $0xc] sm:$0xf] %vm83_vm1, %v82_v30 }

// kernel: vae_encoder_forward.9
= control target key start
LH: loop header
LB: loop body
LE: loop exit
PB: predicated region body
PF: predicated region fallthrough
CT: control target
= control target key end

     0   :  { %vm201_vm0 = vcmask 261120   ;;  %vm269_vm1 = vcmask 257024   ;;  %s540_s1 = inlined_call_operand.vmem [shape: bf16[288,32], index: 1, kind: input, shape index: {}]   ;;  %s541_s0 = inlined_call_operand.vmem [shape: bf16[32,288], index: 0, kind: input, shape index: {}]   ;;  %s542_s2 = inlined_call_operand.vmem [shape: f32[1,32], index: 2, kind: input, shape index: {}]   ;;  %s543_s3 = inlined_call_operand.vmem [shape: bf16[32,32], index: 3, kind: output, shape index: {}]  }
   0x1   :  { %v389_v0 = vld [vmem:[%s540_s1 + $0x38] sm:$0xff]  ;;  %v388_v2 = vld [vmem:[%s540_s1 + $0x30] sm:$0xff]  ;;  %v399_v3 = vld [vmem:[%s540_s1 + $0x88] sm:$0xff] }
   0x2   :  { %v397_v1 = vld [vmem:[%s540_s1 + $0x78] sm:$0xff]  ;;  %208 = vmatpush.bf16.msra.mxu0 %v389_v0  ;;  %400 = vmatpush.bf16.msra.mxu3 %v389_v0  ;;  %v396_v4 = vld [vmem:[%s540_s1 + $0x70] sm:$0xff]  ;;  %v398_v5 = vld [vmem:[%s540_s1 + $0x80] sm:$0xff] }
   0x3   :  { %227 = vmatpush.bf16.msra.mxu1 %v397_v1  ;;  %252 = vmatpush.bf16.msra.mxu2 %v399_v3  ;;  %v288_v6 = vld [vmem:[%s541_s0 + $0x8] sm:$0xf]  ;;  %v378_v7 = vld [vmem:[%s541_s0 + $0x10] sm:$0xf0]  ;;  %v386_v11 = vld [vmem:[%s540_s1 + $0x20] sm:$0xff] }
   0x4   :  { %v387_v8 = vld [vmem:[%s540_s1 + $0x28] sm:$0xff]  ;;  %v289_v10 = vor.u32 %v378_v7, %v288_v6  ;;  %v394_v12 = vld [vmem:[%s540_s1 + $0x60] sm:$0xff]  ;;  %v385_v13 = vld [vmem:[%s540_s1 + $0x18] sm:$0xff] }
   0x5   :  { %v395_v9 = vld [vmem:[%s540_s1 + $0x68] sm:$0xff]  ;;  %v393_v14 = vld [vmem:[%s540_s1 + $0x58] sm:$0xff]  ;;  %v384_v15 = vld [vmem:[%s540_s1 + $0x10] sm:$0xff] }
   0x6   :  { %209 = vmatpush.bf16.msra.mxu0 %v388_v2  ;;  %401 = vmatpush.bf16.msra.mxu3 %v388_v2  ;;  %v392_v16 = vld [vmem:[%s540_s1 + $0x50] sm:$0xff]  ;;  %v300_v17 = vld [vmem:[%s541_s0 + $0x20] sm:$0xf]  ;;  %v381_v18 = vld [vmem:[%s541_s0 + $0x28] sm:$0xf0] }
   0x7   :  { %228 = vmatpush.bf16.msra.mxu1 %v396_v4  ;;  %253 = vmatpush.bf16.msra.mxu2 %v398_v5  ;;  %v383_v19 = vld [vmem:[%s540_s1 + $0x8] sm:$0xff]  ;;  %v301_v21 = vor.u32 %v381_v18, %v300_v17  ;;  %v382_v22 = vld [vmem:[%s540_s1] sm:$0xff]  ;;  %v292_v25 = vld [vmem:[%s541_s0 + $0x18] sm:$0xf] }
   0x8   :  { %v391_v20 = vld [vmem:[%s540_s1 + $0x48] sm:$0xff]  ;;  %v280_v23 = vld [vmem:[%s541_s0] sm:$0xf]  ;;  %v380_v26 = vld [vmem:[%s541_s0 + $0x20] sm:$0xf0] }
   0x9   :  { %v377_v24 = vld [vmem:[%s541_s0 + $0x8] sm:$0xf0]  ;;  %v390_v27 = vld [vmem:[%s540_s1 + $0x40] sm:$0xff]  ;;  %v282_v29 = vld [vmem:[%s541_s0 + $0xc] sm:$0xf0]  ;;  %v293_v31 = vor.u32 %v380_v26, %v292_v25 }
   0xa   :  { %210 = vmatpush.bf16.msra.mxu0 %v387_v8  ;;  %402 = vmatpush.bf16.msra.mxu3 %v387_v8  ;;  %v376_v28 = vld [vmem:[%s541_s0 + $0x4] sm:$0xf]  ;;  %v281_v30 = vor.u32 %v377_v24, %v280_v23  ;;  %v379_v33 = vld [vmem:[%s541_s0 + $0x1c] sm:$0xf]  ;;  %v294_v34 = vld [vmem:[%s541_s0 + $0x24] sm:$0xf0] }
   0xb   :  { %229 = vmatpush.bf16.msra.mxu1 %v395_v9  ;;  %374 = vmatmul.msk.bf16.vlgmr.msra.gmra.mxu2 %vm201_vm0, %v289_v10  ;;  %v285_v32 = vor.u32 %v376_v28, %v282_v29  ;;  %v297_v35 = vor.u32 %v379_v33, %v294_v34  ;;  %v408_v37 = vld [vmem:[%s542_s2] ss:$0 sm:$0xff] }
   0xe   :  { %211 = vmatpush.bf16.msra.mxu0 %v386_v11  ;;  %403 = vmatpush.bf16.msra.mxu3 %v386_v11 }
   0xf   :  { %230 = vmatpush.bf16.msra.mxu1 %v394_v12 }
  0x12   :  { %212 = vmatpush.bf16.msra.mxu0 %v385_v13  ;;  %404 = vmatpush.bf16.msra.mxu3 %v385_v13 }
  0x13   :  { %231 = vmatpush.bf16.msra.mxu1 %v393_v14 }
  0x16   :  { %213 = vmatpush.bf16.msra.mxu0 %v384_v15  ;;  %405 = vmatpush.bf16.msra.mxu3 %v384_v15 }
  0x17   :  { %232 = vmatpush.bf16.msra.mxu1 %v392_v16 }
  0x1a   :  { %214 = vmatpush.bf16.msra.mxu0 %v383_v19  ;;  %406 = vmatpush.bf16.msra.mxu3 %v383_v19 }
  0x1b   :  { %233 = vmatpush.bf16.msra.mxu1 %v391_v20  ;;  %375 = vmatmul.msk.bf16.gmra.mxu2 %vm201_vm0, %v301_v21 }
  0x1e   :  { %215 = vmatpush.bf16.msra.mxu0 %v382_v22  ;;  %407 = vmatpush.bf16.msra.mxu3 %v382_v22 }
  0x1f   :  { %234 = vmatpush.bf16.msra.mxu1 %v390_v27 }
  0x21   :  { %216 = vmatmul.bf16.vlgmr.msra.gmra.mxu0 %v281_v30  ;;  %221 = vmatmul.bf16.vlgmr.msra.gmra.mxu3 %v293_v31 }
  0x22   :  { %235 = vmatmul.bf16.vlgmr.msra.gmra.mxu1 %v285_v32 }
  0x32   :  { %240 = vmatmul.bf16.gmra.mxu1 %v297_v35 }
  0x8e   :  { %v255_v36 = vpop.f32.mrf.mxu2 }
  0x96   :  { %v257_v44 = vpop.f32.mrf.mxu2 }
  0x9e   :  { %v217_v38 = vpop.f32.mrf.mxu0  ;;  %v260_v53 = vpop.f32.mrf.mxu2 }
  0x9f   :  { %v218_v39 = vadd.f32 %v408_v37, %v217_v38  ;;  %v236_v40 = vpop.f32.mrf.mxu1 }
  0xa1   :  { %v237_v41 = vadd.f32 %v236_v40, %v218_v39 }
  0xa3   :  { %v256_v42 = vadd.f32 %v255_v36, %v237_v41 }
  0xa4   :  { %v222_v48 = vpop.f32.mrf.mxu3 }
  0xa5   :  { %v265_v43 = vpack.c.bf16 %v256_v42, %v256_v42  ;;  %v223_v51 = vadd.f32 %v408_v37, %v222_v48 }
  0xa6   :  { %v219_v45 = vpop.f32.mrf.mxu0  ;;  %v262_v62 = vpop.f32.mrf.mxu2 }
  0xa7   :  { %270 = vst.msk [vmem:[%s543_s3] sm:$0xf] %vm269_vm1, %v265_v43  ;;  %v220_v46 = vadd.f32 %v408_v37, %v219_v45  ;;  %v238_v47 = vpop.f32.mrf.mxu1 }
  0xa9   :  { %v239_v49 = vadd.f32 %v238_v47, %v220_v46 }
  0xab   :  { %v258_v50 = vadd.f32 %v257_v44, %v239_v49 }
  0xac   :  { %v224_v57 = vpop.f32.mrf.mxu3 }
  0xad   :  { %v266_v52 = vpack.c.bf16 %v258_v50, %v258_v50  ;;  %v225_v59 = vadd.f32 %v408_v37, %v224_v57 }
  0xaf   :  { %271 = vst.msk [vmem:[%s543_s3 + $0x4] sm:$0xf] %vm269_vm1, %v266_v52  ;;  %v241_v54 = vpop.f32.mrf.mxu1 }
  0xb0   :  { %v242_v55 = vadd.f32 %v241_v54, %v223_v51 }
  0xb2   :  { %v261_v56 = vadd.f32 %v260_v53, %v242_v55 }
  0xb4   :  { %v267_v58 = vpack.c.bf16 %v261_v56, %v261_v56 }
  0xb6   :  { %272 = vst.msk [vmem:[%s543_s3 + $0x8] sm:$0xf] %vm269_vm1, %v267_v58 }
  0xb7   :  { %v243_v60 = vpop.f32.mrf.mxu1 }
  0xb8   :  { %v244_v61 = vadd.f32 %v243_v60, %v225_v59 }
  0xba   :  { %v263_v63 = vadd.f32 %v262_v62, %v244_v61 }
  0xbc   :  { %v268_v0 = vpack.c.bf16 %v263_v63, %v263_v63 }
  0xbe   :  { %273 = vst.msk [vmem:[%s543_s3 + $0xc] sm:$0xf] %vm269_vm1, %v268_v0 }

// kernel: vae_encoder_forward.10
= control target key start
LH: loop header
LB: loop body
LE: loop exit
PB: predicated region body
PF: predicated region fallthrough
CT: control target
= control target key end

     0   :  { %vm210_vm0 = vcmask 261120   ;;  %vm292_vm1 = vcmask 1043456   ;;  %vm285_vm2 = vcmask 64512   ;;  %vm331_vm3 = vcmask 257024   ;;  %s593_s1 = inlined_call_operand.vmem [shape: bf16[288,8], index: 1, kind: input, shape index: {}]   ;;  %s594_s0 = inlined_call_operand.vmem [shape: bf16[32,288], index: 0, kind: input, shape index: {}]   ;;  %s595_s2 = inlined_call_operand.vmem [shape: f32[1,8], index: 2, kind: input, shape index: {}]   ;;  %s596_s4 = inlined_call_operand.vmem [shape: f32[1,32], index: 4, kind: input, shape index: {}]   ;;  %s597_s3 = inlined_call_operand.vmem [shape: bf16[8,32], index: 3, kind: input, shape index: {}]   ;;  %s598_s5 = inlined_call_operand.vmem [shape: bf16[32,32], index: 5, kind: input, shape index: {}]   ;;  %s599_s6 = inlined_call_operand.vmem [shape: bf16[32,32], index: 6, kind: output, shape index: {}]  }
   0x1   :  { %v423_v0 = vld [vmem:[%s593_s1 + $0x38] sm:$0xff]  ;;  %v422_v2 = vld [vmem:[%s593_s1 + $0x30] sm:$0xff]  ;;  %v433_v4 = vld [vmem:[%s593_s1 + $0x88] sm:$0xff] }
   0x2   :  { %v431_v1 = vld [vmem:[%s593_s1 + $0x78] sm:$0xff]  ;;  %217 = vmatpush.bf16.msra.mxu0 %v423_v0  ;;  %v430_v3 = vld [vmem:[%s593_s1 + $0x70] sm:$0xff]  ;;  %261 = vmatpush.bf16.msra.mxu2 %v433_v4  ;;  %v432_v5 = vld [vmem:[%s593_s1 + $0x80] sm:$0xff] }
   0x3   :  { %236 = vmatpush.bf16.msra.mxu1 %v431_v1  ;;  %v25_v6 = vld [vmem:[%s594_s0 + $0x8] sm:$0xf]  ;;  %v27_v7 = vld [vmem:[%s594_s0 + $0x14] sm:$0xf]  ;;  %v420_v14 = vld [vmem:[%s593_s1 + $0x20] sm:$0xff] }
   0x4   :  { %v34_v8 = vunpack.c.l.bf16 %v25_v6  ;;  %v421_v9 = vld [vmem:[%s593_s1 + $0x28] sm:$0xff]  ;;  %v37_v11 = vunpack.c.l.bf16 %v27_v7  ;;  %v428_v15 = vld [vmem:[%s593_s1 + $0x60] sm:$0xff]  ;;  %v419_v19 = vld [vmem:[%s593_s1 + $0x18] sm:$0xff] }
   0x5   :  { %v429_v10 = vld [vmem:[%s593_s1 + $0x68] sm:$0xff]  ;;  %v29_v17 = vld [vmem:[%s594_s0 + $0x20] sm:$0xf]  ;;  %v427_v20 = vld [vmem:[%s593_s1 + $0x58] sm:$0xff] }
   0x6   :  { %218 = vmatpush.bf16.msra.mxu0 %v422_v2  ;;  %v46_v12 = vmax.f32 %v34_v8, 0.0  ;;  %262 = vmatpush.bf16.msra.mxu2 %v432_v5  ;;  %v49_v13 = vmax.f32 %v37_v11, 0.0  ;;  %v31_v18 = vld [vmem:[%s594_s0 + $0x2c] sm:$0xf]  ;;  %v40_v21 = vunpack.c.l.bf16 %v29_v17  ;;  %v418_v23 = vld [vmem:[%s593_s1 + $0x10] sm:$0xff]  ;;  %v24_v25 = vld [vmem:[%s594_s0] sm:$0xff] }
   0x7   :  { %237 = vmatpush.bf16.msra.mxu1 %v430_v3  ;;  %v43_v22 = vunpack.c.l.bf16 %v31_v18  ;;  %v426_v24 = vld [vmem:[%s593_s1 + $0x50] sm:$0xff]  ;;  %v32_v29 = vunpack.c.l.bf16 %v24_v25  ;;  %v33_v31 = vunpack.c.h.bf16 %v24_v25  ;;  %v417_v33 = vld [vmem:[%s593_s1 + $0x8] sm:$0xff]  ;;  %v416_v40 = vld [vmem:[%s593_s1] sm:$0xff] }
   0x8   :  { %v58_v16 = vpack.c.bf16 %v49_v13, %v46_v12  ;;  %v26_v26 = vld [vmem:[%s594_s0 + $0xc] sm:$0xff]  ;;  %v52_v27 = vmax.f32 %v40_v21, 0.0  ;;  %v424_v41 = vld [vmem:[%s593_s1 + $0x40] sm:$0xff]  ;;  %v28_v44 = vld [vmem:[%s594_s0 + $0x18] sm:$0xff] }
   0x9   :  { %v55_v28 = vmax.f32 %v43_v22, 0.0  ;;  %v35_v30 = vunpack.c.l.bf16 %v26_v26  ;;  %v36_v32 = vunpack.c.h.bf16 %v26_v26  ;;  %v425_v34 = vld [vmem:[%s593_s1 + $0x48] sm:$0xff]  ;;  %v44_v36 = vmax.f32 %v32_v29, 0.0  ;;  %v280_v56 = vld [vmem:[%s597_s3] sm:$0xf] }
   0xa   :  { %219 = vmatpush.bf16.msra.mxu0 %v421_v9  ;;  %412 = vmatmul.msk.bf16.vlgmr.msra.gmra.mxu2 %vm210_vm0, %v58_v16  ;;  %v45_v38 = vmax.f32 %v33_v31, 0.0  ;;  %v30_v45 = vld [vmem:[%s594_s0 + $0x24] sm:$0xff]  ;;  %v38_v46 = vunpack.c.l.bf16 %v28_v44  ;;  %v39_v48 = vunpack.c.h.bf16 %v28_v44  ;;  %v294_v57 = vsel %vm292_vm1, %v280_v56, 0  ;;  %v443_v59 = vld [vmem:[%s595_s2] ss:$0 sm:$0xff] }
   0xb   :  { %238 = vmatpush.bf16.msra.mxu1 %v429_v10  ;;  %v61_v35 = vpack.c.bf16 %v55_v28, %v52_v27  ;;  %v47_v37 = vmax.f32 %v35_v30, 0.0  ;;  %v48_v39 = vmax.f32 %v36_v32, 0.0  ;;  %v41_v47 = vunpack.c.l.bf16 %v30_v45  ;;  %303 = vmatpush.bf16.msra.mxu3 %v294_v57  ;;  %v435_v25 = vld [vmem:[%s598_s5] sm:$0xff]  }
   0xc   :  { %v42_v49 = vunpack.c.h.bf16 %v30_v45  ;;  %v50_v50 = vmax.f32 %v38_v46, 0.0  ;;  %v51_v52 = vmax.f32 %v39_v48, 0.0  ;;  %v444_v26 = vld [vmem:[%s596_s4] ss:$0 sm:$0xff]  ;;  %v436_v27 = vunpack.c.l.bf16 %v435_v25 }
   0xd   :  { %v56_v42 = vpack.c.bf16 %v47_v37, %v44_v36  ;;  %v57_v43 = vpack.c.bf16 %v48_v39, %v45_v38  ;;  %v53_v51 = vmax.f32 %v41_v47, 0.0  ;;  %v437_v32 = vunpack.c.h.bf16 %v435_v25  ;;  %v442_v36 = vld [vmem:[%s598_s5 + $0x8] sm:$0xff]  }
   0xe   :  { %220 = vmatpush.bf16.msra.mxu0 %v420_v14  ;;  %v54_v53 = vmax.f32 %v42_v49, 0.0  ;;  %v440_v38 = vunpack.c.l.bf16 %v442_v36 }
   0xf   :  { %239 = vmatpush.bf16.msra.mxu1 %v428_v15  ;;  %v59_v54 = vpack.c.bf16 %v53_v51, %v50_v50 }
  0x10   :  { %v60_v55 = vpack.c.bf16 %v54_v53, %v51_v52 }
  0x12   :  { %221 = vmatpush.bf16.msra.mxu0 %v419_v19 }
  0x13   :  { %240 = vmatpush.bf16.msra.mxu1 %v427_v20 }
  0x16   :  { %222 = vmatpush.bf16.msra.mxu0 %v418_v23 }
  0x17   :  { %241 = vmatpush.bf16.msra.mxu1 %v426_v24 }
  0x1a   :  { %223 = vmatpush.bf16.msra.mxu0 %v417_v33  ;;  %413 = vmatmul.msk.bf16.gmra.mxu2 %vm210_vm0, %v61_v35 }
  0x1b   :  { %242 = vmatpush.bf16.msra.mxu1 %v425_v34 }
  0x1e   :  { %224 = vmatpush.bf16.msra.mxu0 %v416_v40 }
  0x1f   :  { %243 = vmatpush.bf16.msra.mxu1 %v424_v41 }
  0x21   :  { %225 = vmatmul.bf16.vlgmr.msra.gmra.mxu0 %v56_v42 }
  0x22   :  { %244 = vmatmul.bf16.vlgmr.msra.gmra.mxu1 %v57_v43  ;;  %v441_v43 = vunpack.c.h.bf16 %v442_v36 }
  0x31   :  { %230 = vmatmul.bf16.gmra.mxu0 %v59_v54 }
  0x32   :  { %249 = vmatmul.bf16.gmra.mxu1 %v60_v55 }
  0x8d   :  { %v264_v58 = vpop.f32.mrf.mxu2 }
  0x95   :  { %v266_v0 = vpop.f32.mrf.mxu2 }
  0x9d   :  { %v269_v12 = vpop.f32.mrf.mxu2 }
  0x9e   :  { %v226_v60 = vpop.f32.mrf.mxu0 }
  0x9f   :  { %v245_v61 = vpop.f32.mrf.mxu1  ;;  %v227_v62 = vadd.f32 %v443_v59, %v226_v60 }
  0xa1   :  { %v246_v63 = vadd.f32 %v245_v61, %v227_v62 }
  0xa3   :  { %v265_v4 = vadd.f32 %v264_v58, %v246_v63 }
  0xa5   :  { %v274_v7 = vmax.f32 %v265_v4, 0.0  ;;  %v271_v20 = vpop.f32.mrf.mxu2 }
  0xa6   :  { %v228_v1 = vpop.f32.mrf.mxu0 }
  0xa7   :  { %v247_v2 = vpop.f32.mrf.mxu1  ;;  %v229_v3 = vadd.f32 %v443_v59, %v228_v1 }
  0xa9   :  { %v248_v5 = vadd.f32 %v247_v2, %v229_v3 }
  0xab   :  { %v267_v6 = vadd.f32 %v266_v0, %v248_v5 }
  0xad   :  { %v275_v8 = vmax.f32 %v267_v6, 0.0 }
  0xae   :  { %v231_v9 = vpop.f32.mrf.mxu0 }
  0xaf   :  { %v250_v10 = vpop.f32.mrf.mxu1  ;;  %v278_v11 = vpack.c.bf16 %v275_v8, %v274_v7  ;;  %v232_v13 = vadd.f32 %v443_v59, %v231_v9 }
  0xb1   :  { %414 = vmatmul.msk.bf16.vlgmr.msra.gmra.mxu3 %vm285_vm2, %v278_v11  ;;  %v251_v14 = vadd.f32 %v250_v10, %v232_v13 }
  0xb3   :  { %v270_v18 = vadd.f32 %v269_v12, %v251_v14 }
  0xb5   :  { %v276_v22 = vmax.f32 %v270_v18, 0.0 }
  0xb6   :  { %v233_v15 = vpop.f32.mrf.mxu0 }
  0xb7   :  { %v234_v16 = vadd.f32 %v443_v59, %v233_v15  ;;  %v252_v17 = vpop.f32.mrf.mxu1 }
  0xb9   :  { %v253_v19 = vadd.f32 %v252_v17, %v234_v16 }
  0xbb   :  { %v272_v21 = vadd.f32 %v271_v20, %v253_v19 }
  0xbd   :  { %v277_v23 = vmax.f32 %v272_v21, 0.0 }
  0xbf   :  { %v279_v24 = vpack.c.bf16 %v277_v23, %v276_v22 }
  0xc1   :  { %415 = vmatmul.msk.bf16.gmra.mxu3 %vm285_vm2, %v279_v24 }
 0x134   :  { %v305_v28 = vpop.f32.mrf.mxu3 }
 0x135   :  { %v306_v29 = vadd.f32 %v444_v26, %v305_v28 }
 0x137   :  { %v323_v30 = vadd.f32 %v436_v27, %v306_v29 }
 0x139   :  { %v327_v31 = vpack.c.bf16 %v323_v30, %v323_v30 }
 0x13b   :  { %332 = vst.msk [vmem:[%s599_s6] sm:$0xf] %vm331_vm3, %v327_v31 }
 0x13c   :  { %v307_v33 = vpop.f32.mrf.mxu3 }
 0x13d   :  { %v308_v34 = vadd.f32 %v444_v26, %v307_v33 }
 0x13f   :  { %v324_v35 = vadd.f32 %v437_v32, %v308_v34 }
 0x141   :  { %v328_v37 = vpack.c.bf16 %v324_v35, %v324_v35 }
 0x143   :  { %333 = vst.msk [vmem:[%s599_s6 + $0x4] sm:$0xf] %vm331_vm3, %v328_v37 }
 0x144   :  { %v310_v39 = vpop.f32.mrf.mxu3 }
 0x145   :  { %v311_v40 = vadd.f32 %v444_v26, %v310_v39 }
 0x147   :  { %v325_v41 = vadd.f32 %v440_v38, %v311_v40 }
 0x149   :  { %v329_v42 = vpack.c.bf16 %v325_v41, %v325_v41 }
 0x14b   :  { %334 = vst.msk [vmem:[%s599_s6 + $0x8] sm:$0xf] %vm331_vm3, %v329_v42 }
 0x14c   :  { %v312_v44 = vpop.f32.mrf.mxu3 }
 0x14d   :  { %v313_v45 = vadd.f32 %v444_v26, %v312_v44 }
 0x14f   :  { %v326_v46 = vadd.f32 %v441_v43, %v313_v45 }
 0x151   :  { %v330_v47 = vpack.c.bf16 %v326_v46, %v326_v46 }
 0x153   :  { %335 = vst.msk [vmem:[%s599_s6 + $0xc] sm:$0xf] %vm331_vm3, %v330_v47 }

// kernel: vae_encoder_forward.13
= control target key start
LH: loop header
LB: loop body
LE: loop exit
PB: predicated region body
PF: predicated region fallthrough
CT: control target
= control target key end

     0   :  { %vm354_vm0 = vcmask 261120   ;;  %s691_s1 = inlined_call_operand.vmem [shape: bf16[512,32], index: 1, kind: input, shape index: {}]   ;;  %s692_s2 = inlined_call_operand.vmem [shape: f32[1,32], index: 2, kind: input, shape index: {}]   ;;  %s693_s0 = inlined_call_operand.vmem [shape: bf16[16,512], index: 0, kind: input, shape index: {}]   ;;  %s694_s3 = inlined_call_operand.vmem [shape: f32[16,32], index: 3, kind: output, shape index: {}]  }
   0x1   :  { %v516_v0 = vld [vmem:[%s691_s1 + $0x38] sm:$0xff]  ;;  %v515_v4 = vld [vmem:[%s691_s1 + $0x30] sm:$0xff]  ;;  %v514_v8 = vld [vmem:[%s691_s1 + $0x28] sm:$0xff] }
   0x2   :  { %v524_v1 = vld [vmem:[%s691_s1 + $0x78] sm:$0xff]  ;;  %298 = vmatpush.bf16.msra.mxu0 %v516_v0  ;;  %v523_v5 = vld [vmem:[%s691_s1 + $0x70] sm:$0xff]  ;;  %v522_v9 = vld [vmem:[%s691_s1 + $0x68] sm:$0xff] }
   0x3   :  { %v532_v2 = vld [vmem:[%s691_s1 + $0xb8] sm:$0xff]  ;;  %312 = vmatpush.bf16.msra.mxu1 %v524_v1  ;;  %v531_v6 = vld [vmem:[%s691_s1 + $0xb0] sm:$0xff]  ;;  %v530_v10 = vld [vmem:[%s691_s1 + $0xa8] sm:$0xff] }
   0x4   :  { %v540_v3 = vld [vmem:[%s691_s1 + $0xf8] sm:$0xff]  ;;  %326 = vmatpush.bf16.msra.mxu2 %v532_v2  ;;  %v539_v7 = vld [vmem:[%s691_s1 + $0xf0] sm:$0xff]  ;;  %v538_v11 = vld [vmem:[%s691_s1 + $0xe8] sm:$0xff] }
   0x5   :  { %340 = vmatpush.bf16.msra.mxu3 %v540_v3  ;;  %v513_v12 = vld [vmem:[%s691_s1 + $0x20] sm:$0xff]  ;;  %v512_v16 = vld [vmem:[%s691_s1 + $0x18] sm:$0xff]  ;;  %v511_v20 = vld [vmem:[%s691_s1 + $0x10] sm:$0xff] }
   0x6   :  { %299 = vmatpush.bf16.msra.mxu0 %v515_v4  ;;  %v521_v13 = vld [vmem:[%s691_s1 + $0x60] sm:$0xff]  ;;  %v520_v17 = vld [vmem:[%s691_s1 + $0x58] sm:$0xff]  ;;  %v519_v21 = vld [vmem:[%s691_s1 + $0x50] sm:$0xff] }
   0x7   :  { %313 = vmatpush.bf16.msra.mxu1 %v523_v5  ;;  %v529_v14 = vld [vmem:[%s691_s1 + $0xa0] sm:$0xff]  ;;  %v528_v18 = vld [vmem:[%s691_s1 + $0x98] sm:$0xff]  ;;  %v527_v22 = vld [vmem:[%s691_s1 + $0x90] sm:$0xff] }
   0x8   :  { %327 = vmatpush.bf16.msra.mxu2 %v531_v6  ;;  %v537_v15 = vld [vmem:[%s691_s1 + $0xe0] sm:$0xff]  ;;  %v536_v19 = vld [vmem:[%s691_s1 + $0xd8] sm:$0xff]  ;;  %v535_v23 = vld [vmem:[%s691_s1 + $0xd0] sm:$0xff] }
   0x9   :  { %341 = vmatpush.bf16.msra.mxu3 %v539_v7  ;;  %v510_v24 = vld [vmem:[%s691_s1 + $0x8] sm:$0xff]  ;;  %v509_v28 = vld [vmem:[%s691_s1] sm:$0xff]  ;;  %v507_v33 = vld [vmem:[%s693_s0 + $0xc] sm:$0xf0] }
   0xa   :  { %300 = vmatpush.bf16.msra.mxu0 %v514_v8  ;;  %v518_v25 = vld [vmem:[%s691_s1 + $0x48] sm:$0xff]  ;;  %v517_v29 = vld [vmem:[%s691_s1 + $0x40] sm:$0xff]  ;;  %v365_v35 = vld [vmem:[%s693_s0 + $0x10] sm:$0xf0] }
   0xb   :  { %314 = vmatpush.bf16.msra.mxu1 %v522_v9  ;;  %v526_v26 = vld [vmem:[%s691_s1 + $0x88] sm:$0xff]  ;;  %v525_v30 = vld [vmem:[%s691_s1 + $0x80] sm:$0xff]  ;;  %v508_v37 = vld [vmem:[%s693_s0 + $0x14] sm:$0xf0] }
   0xc   :  { %328 = vmatpush.bf16.msra.mxu2 %v530_v10  ;;  %v534_v27 = vld [vmem:[%s691_s1 + $0xc8] sm:$0xff]  ;;  %v533_v31 = vld [vmem:[%s691_s1 + $0xc0] sm:$0xff]  ;;  %v373_v39 = vld [vmem:[%s693_s0 + $0x18] sm:$0xf0] }
   0xd   :  { %342 = vmatpush.bf16.msra.mxu3 %v538_v11  ;;  %v363_v32 = vld [vmem:[%s693_s0] sm:$0xf]  ;;  %v505_v34 = vld [vmem:[%s693_s0 + $0x4] sm:$0xf]  ;;  %v371_v36 = vld [vmem:[%s693_s0 + $0x8] sm:$0xf] }
   0xe   :  { %301 = vmatpush.bf16.msra.mxu0 %v513_v12  ;;  %v506_v38 = vld [vmem:[%s693_s0 + $0xc] sm:$0xf]  ;;  %v364_v40 = vor.u32 %v507_v33, %v363_v32  ;;  %v368_v41 = vor.u32 %v505_v34, %v365_v35  ;;  %v372_v42 = vor.u32 %v508_v37, %v371_v36  ;;  %v541_v44 = vld [vmem:[%s692_s2] ss:$0 sm:$0xff] }
   0xf   :  { %315 = vmatpush.bf16.msra.mxu1 %v521_v13  ;;  %v376_v43 = vor.u32 %v506_v38, %v373_v39 }
  0x10   :  { %329 = vmatpush.bf16.msra.mxu2 %v529_v14 }
  0x11   :  { %343 = vmatpush.bf16.msra.mxu3 %v537_v15 }
  0x12   :  { %302 = vmatpush.bf16.msra.mxu0 %v512_v16 }
  0x13   :  { %316 = vmatpush.bf16.msra.mxu1 %v520_v17 }
  0x14   :  { %330 = vmatpush.bf16.msra.mxu2 %v528_v18 }
  0x15   :  { %344 = vmatpush.bf16.msra.mxu3 %v536_v19 }
  0x16   :  { %303 = vmatpush.bf16.msra.mxu0 %v511_v20 }
  0x17   :  { %317 = vmatpush.bf16.msra.mxu1 %v519_v21 }
  0x18   :  { %331 = vmatpush.bf16.msra.mxu2 %v527_v22 }
  0x19   :  { %345 = vmatpush.bf16.msra.mxu3 %v535_v23 }
  0x1a   :  { %304 = vmatpush.bf16.msra.mxu0 %v510_v24 }
  0x1b   :  { %318 = vmatpush.bf16.msra.mxu1 %v518_v25 }
  0x1c   :  { %332 = vmatpush.bf16.msra.mxu2 %v526_v26 }
  0x1d   :  { %346 = vmatpush.bf16.msra.mxu3 %v534_v27 }
  0x1e   :  { %305 = vmatpush.bf16.msra.mxu0 %v509_v28 }
  0x1f   :  { %319 = vmatpush.bf16.msra.mxu1 %v517_v29 }
  0x20   :  { %333 = vmatpush.bf16.msra.mxu2 %v525_v30 }
  0x21   :  { %347 = vmatpush.bf16.msra.mxu3 %v533_v31  ;;  %306 = vmatmul.bf16.vlgmr.msra.gmra.mxu0 %v364_v40 }
  0x22   :  { %320 = vmatmul.bf16.vlgmr.msra.gmra.mxu1 %v368_v41 }
  0x23   :  { %334 = vmatmul.bf16.vlgmr.msra.gmra.mxu2 %v372_v42 }
  0x24   :  { %348 = vmatmul.bf16.vlgmr.msra.gmra.mxu3 %v376_v43 }
  0x9e   :  { %v307_v45 = vpop.f32.mrf.mxu0 }
  0x9f   :  { %v308_v46 = vadd.f32 %v541_v44, %v307_v45  ;;  %v321_v47 = vpop.f32.mrf.mxu1 }
  0xa1   :  { %v322_v48 = vadd.f32 %v321_v47, %v308_v46 }
  0xa6   :  { %v335_v49 = vpop.f32.mrf.mxu2  ;;  %v309_v52 = vpop.f32.mrf.mxu0 }
  0xa7   :  { %v349_v50 = vpop.f32.mrf.mxu3  ;;  %v336_v51 = vadd.f32 %v335_v49, %v322_v48  ;;  %v310_v54 = vadd.f32 %v541_v44, %v309_v52  ;;  %v323_v55 = vpop.f32.mrf.mxu1 }
  0xa9   :  { %v350_v53 = vadd.f32 %v349_v50, %v336_v51  ;;  %v324_v56 = vadd.f32 %v323_v55, %v310_v54 }
  0xab   :  { %355 = vst.msk [vmem:[%s694_s3] sm:$0xff] %vm354_vm0, %v350_v53 }
  0xae   :  { %v337_v57 = vpop.f32.mrf.mxu2 }
  0xaf   :  { %v338_v58 = vadd.f32 %v337_v57, %v324_v56  ;;  %v351_v59 = vpop.f32.mrf.mxu3 }
  0xb1   :  { %v352_v60 = vadd.f32 %v351_v59, %v338_v58 }
  0xb3   :  { %356 = vst.msk [vmem:[%s694_s3 + $0x8] sm:$0xff] %vm354_vm0, %v352_v60 }

</bundles_post_ra>
